<compile_context>
chip_gen: v7x
topology: tpu7x:2x2x1
jax: 0.10.0
libtpu: 0.0.40
codegen_flags: <defaults>
</compile_context>

<pallas_src>
import functools

import jax
import jax.numpy as jnp
import numpy as np
from jax.experimental import pallas as pl
from jax.experimental.pallas import tpu as pltpu


def _round_up(x, m):
    return (x + m - 1) // m * m


def _divisors(x):
    return [d for d in range(1, x + 1) if x % d == 0]


def _vmem_capacity_bytes():
    """Physical VMEM capacity; conservative (v7x) fallback if unqueryable."""
    try:
        info = pltpu.get_tpu_info()
        cap = int(getattr(info, "vmem_capacity_bytes", 0))
        if cap > 0:
            return cap
    except Exception:
        pass
    return 64 * 1024 * 1024


def _footprint_bytes(bt, th, wp2, wo, c, n_inputs):
    """Approximate per-grid-step VMEM footprint (bytes, f32)."""
    f = 4
    main = bt * th * wp2 * c * f            # per-input main window
    halo = bt * 2 * wp2 * c * f             # per-input 2-row halo window
    inp = n_inputs * 2 * (main + halo)      # double-buffered inputs
    out = 2 * bt * th * wo * c * f          # double-buffered output
    fused = bt * (th + 2) * wp2 * c * f     # fused-window scratch
    temps = 3 * bt * th * wo * c * f        # depthwise acc + matmul out + slack
    consts = 2 * (9 * c + c * c + c) * f    # dw / pw / bias
    return inp + out + fused + temps + consts


def _choose_tiles(B, h_eff, wp2, wo, c, n_inputs, budget, row_tile):
    """Pick (batch tile, row tile) maximizing block size within the budget."""
    b_divs = sorted(_divisors(B), reverse=True)
    if row_tile is not None:
        if h_eff % row_tile or row_tile % 2:
            raise ValueError("row_tile must be an even divisor of the "
                             "(even-rounded) height")
        t_divs = [row_tile]
    else:
        # th must be even so the 2-row halo block index (r+1)*th/2 is integral.
        t_divs = sorted((d for d in _divisors(h_eff) if d % 2 == 0),
                        reverse=True)

    best = None
    for th in t_divs:
        for bt in b_divs:
            if _footprint_bytes(bt, th, wp2, wo, c, n_inputs) <= budget:
                if best is None or bt * th > best[0] * best[1]:
                    best = (bt, th)
    if best is None:
        # Nothing fits (extreme W*C): smallest block, let the compiler cope.
        # TODO(synk): add a width-tiling grid axis for extreme W*C levels.
        bt, th = 1, min(t_divs)
    else:
        bt, th = best

    # Megacore: keep the parallel grid >= 2 steps so both v7x TCs get work.
    while (B // bt) * (h_eff // th) < 2:
        if bt > 1:
            bt = max(d for d in _divisors(B) if d < bt)
        else:
            smaller = [d for d in t_divs if d < th]
            if not smaller:
                break
            th = max(smaller)
    return bt, th


def wff_kernel(w_ref, *refs, num_inputs, eps, mxu_bf16):
    # refs = (x0_main, x0_halo, x1_main, x1_halo, ..., dw, pw, bias, out,
    #         fused_scratch)
    #   x_main : (Bt, TH,   W8+2, C) rows [r*TH, (r+1)*TH) of the padded input
    #   x_halo : (Bt, 2,    W8+2, C) rows [(r+1)*TH, (r+1)*TH+2)
    #   dw     : (3, 3, C) depthwise kernel
    #   pw     : (C, C)    pointwise kernel with BN scale folded into columns
    #   bias   : (1, C)    folded BN bias
    #   out    : (Bt, TH, W8, C)
    #   fused  : (Bt, TH+2, W8+2, C) VMEM scratch
    # w_ref: (num_inputs,) f32 in SMEM (raw, un-ReLU'd fusion weights)
    xs = refs[:2 * num_inputs]
    dw_ref, pw_ref, bias_ref, o_ref, fused_ref = refs[2 * num_inputs:]
    bt, th, wo, c = o_ref.shape

    # --- weighted fusion; normalization folded into the scalar weights -------
    ws = [jnp.maximum(w_ref[i], 0.0) for i in range(num_inputs)]
    total = ws[0]
    for wi in ws[1:]:
        total = total + wi
    inv = 1.0 / (total + eps)

    fm = xs[0][...] * (ws[0] * inv)
    fh = xs[1][...] * (ws[0] * inv)
    for i in range(1, num_inputs):
        fm = fm + xs[2 * i][...] * (ws[i] * inv)
        fh = fh + xs[2 * i + 1][...] * (ws[i] * inv)
    fused_ref[:, 0:th, :, :] = fm            # rows [r*TH, (r+1)*TH)
    fused_ref[:, th:th + 2, :, :] = fh       # 2-row bottom halo

    # --- depthwise 3x3 conv (padding=1) via 9 shifted windows ----------------
    acc = fused_ref[:, 0:th, 0:wo, :] * dw_ref[0, 0, :]
    for dy in range(3):
        for dx in range(3):
            if dy == 0 and dx == 0:
                continue
            acc = acc + fused_ref[:, dy:dy + th, dx:dx + wo, :] * dw_ref[dy, dx, :]
    # TODO(synk): route the +-1/+-2 W shifts through pltpu.roll (XLU slot) once
    # HBM traffic stops being the binding resource; 6 of 9 taps currently emit
    # sublane shifts on the load/VPU path.

    # --- pointwise 1x1 as (Bt*TH*W8, C) x (C, C) MXU matmul ------------------
    # wo % 8 == 0 is guaranteed by the wrapper, so the reshape preserves the
    # sublane mapping (no VMEM relayout copies).
    lhs = acc.reshape(bt * th * wo, c)
    if mxu_bf16:
        y = jnp.dot(lhs.astype(jnp.bfloat16), pw_ref[...],
                    preferred_element_type=jnp.float32)
    else:
        y = jnp.dot(lhs, pw_ref[...], preferred_element_type=jnp.float32)
    y = jnp.maximum(y + bias_ref[...], 0.0)
    o_ref[...] = y.reshape(bt, th, wo, c)


def weighted_feature_fusion(xs_nchw, fusion_w, dw, pw, bn_scale, bn_bias,
                            eps=1e-4, *, row_tile=None, mxu_bf16=False):
    """xs_nchw: list of arrays of shape (B, C, H, W), float32."""
    n = len(xs_nchw)
    B, C, H, W = xs_nchw[0].shape

    # Channel padding policy: the kernel is memory bound, so only pad channels
    # to a multiple of 128 when the extra HBM traffic is <= 25%; never for
    # small C (padding 16 -> 128 would multiply HBM bytes by 8x).
    cp = _round_up(C, 128)
    if cp != C and (cp - C) * 4 > C:
        cp = C

    w8 = _round_up(W, 8)       # keeps the in-kernel reshape layout-preserving
    h_eff = H + (H % 2)        # even rows -> integral 2-row halo block index
    wp2 = w8 + 2               # padded input width (1-px conv halo + align)

    def prep(x):
        # NCHW -> NHWC with the conv halo, row/width alignment padding and
        # (optional) channel padding fused into one pad that XLA merges with
        # the layout change (single HBM pass per input).
        x = jnp.transpose(x, (0, 2, 3, 1)).astype(jnp.float32)
        return jnp.pad(x, ((0, 0),
                           (1, 1 + (h_eff - H)),
                           (1, 1 + (w8 - W)),
                           (0, cp - C)))

    xs = [prep(x) for x in xs_nchw]

    dw_p = jnp.pad(dw.astype(jnp.float32), ((0, 0), (0, 0), (0, cp - C)))
    # Fold BN scale into the pointwise weight columns; only bias add in-kernel.
    pw_s = pw.astype(jnp.float32) * bn_scale.reshape(1, C).astype(jnp.float32)
    pw_p = jnp.pad(pw_s, ((0, cp - C), (0, cp - C)))
    if mxu_bf16:
        pw_p = pw_p.astype(jnp.bfloat16)       # bf16 MXU feed, f32 accumulate
    bias_p = jnp.pad(bn_bias.reshape(1, C).astype(jnp.float32),
                     ((0, 0), (0, cp - C)))

    # Per-step VMEM budgeting from the physical capacity of the current chip
    # (128 MiB v5e/v6e, 64 MiB v7x): target ~65% for the working set and set
    # the scoped limit at ~80%.
    vmem_cap = _vmem_capacity_bytes()
    budget = int(vmem_cap * 0.65)
    vmem_limit = int(vmem_cap * 0.80)

    bt, th = _choose_tiles(B, h_eff, wp2, w8, cp, n, budget, row_tile)

    kernel = functools.partial(wff_kernel, num_inputs=n, eps=eps,
                               mxu_bf16=mxu_bf16)

    in_specs = [pl.BlockSpec(memory_space=pltpu.MemorySpace.SMEM)]  # fusion w
    operands = [fusion_w.astype(jnp.float32)]
    for x in xs:
        # Each input is passed twice (same HBM buffer): a th-row main window
        # and the 2-row bottom halo.  Overlapping row windows expressed with
        # plain blocked indexing (th is even, so (r+1)*th/2 is an integer
        # block index for the 2-row halo spec).
        in_specs.append(
            pl.BlockSpec((bt, th, wp2, cp), lambda b, r: (b, r, 0, 0)))
        in_specs.append(
            pl.BlockSpec((bt, 2, wp2, cp),
                         lambda b, r: (b, (r + 1) * (th // 2), 0, 0)))
        operands += [x, x]
    # Constant operands (index maps constant across the grid).
    in_specs += [
        pl.BlockSpec((3, 3, cp), lambda b, r: (0, 0, 0)),   # depthwise weights
        pl.BlockSpec((cp, cp), lambda b, r: (0, 0)),        # pointwise (BN-scaled)
        pl.BlockSpec((1, cp), lambda b, r: (0, 0)),         # BN bias
    ]
    operands += [dw_p, pw_p, bias_p]

    out_nhwc = pl.pallas_call(
        kernel,
        out_shape=jax.ShapeDtypeStruct((B, h_eff, w8, cp), jnp.float32),
        grid=(B // bt, h_eff // th),
        in_specs=in_specs,
        out_specs=pl.BlockSpec((bt, th, w8, cp), lambda b, r: (b, r, 0, 0)),
        scratch_shapes=[pltpu.VMEM((bt, th + 2, wp2, cp), jnp.float32)],
        compiler_params=pltpu.CompilerParams(
            dimension_semantics=("parallel", "parallel"),
            vmem_limit_bytes=vmem_limit),
    )(*operands)

    # The slice is a no-op when H/W/C already conform (the common case now
    # that channels are not padded for small C); the transpose is NCHW
    # interface plumbing — an NHWC consumer would take out_nhwc directly.
    out = out_nhwc[:, :H, :W, :C]
    return jnp.transpose(out, (0, 3, 1, 2))


def reference(xs_nchw, fusion_w, dw, pw, bn_scale, bn_bias, eps=1e-4):
    """Pure-JAX reference (XLA convs) for correctness checking."""
    w = jnp.maximum(fusion_w, 0.0)
    fused = xs_nchw[0] * w[0]
    for i in range(1, len(xs_nchw)):
        fused = fused + xs_nchw[i] * w[i]
    fused = fused / (w.sum() + eps)                                  # NCHW
    x = jnp.transpose(fused, (0, 2, 3, 1))                           # NHWC
    C = x.shape[-1]
    dw_hwio = dw[:, :, None, :]                                      # (3,3,1,C)
    y = jax.lax.conv_general_dilated(
        x, dw_hwio, window_strides=(1, 1), padding="SAME",
        dimension_numbers=("NHWC", "HWIO", "NHWC"), feature_group_count=C)
    y = jnp.einsum("bhwc,cd->bhwd", y, pw)
    y = y * bn_scale + bn_bias
    y = jnp.maximum(y, 0.0)
    return jnp.transpose(y, (0, 3, 1, 2))


if __name__ == "__main__":
    key = jax.random.PRNGKey(0)

    def make_case(case_key, B, C, H, W, n):
        ks = jax.random.split(case_key, n + 2)
        xs = [jax.random.normal(ks[i], (B, C, H, W), jnp.float32)
              for i in range(n)]
        fusion_w = jnp.ones((n,), jnp.float32)            # nn.Parameter(ones)
        dw = 0.1 * jax.random.normal(ks[n], (3, 3, C), jnp.float32)
        pw = 0.1 * jax.random.normal(ks[n + 1], (C, C), jnp.float32)
        # BatchNorm2d defaults (eval): gamma=1, beta=0, mean=0, var=1, eps=1e-5
        bn_eps = 1e-5
        gamma = jnp.ones((C,), jnp.float32)
        beta = jnp.zeros((C,), jnp.float32)
        mean = jnp.zeros((C,), jnp.float32)
        var = jnp.ones((C,), jnp.float32)
        bn_scale = gamma / jnp.sqrt(var + bn_eps)
        bn_bias = beta - mean * bn_scale
        return xs, fusion_w, dw, pw, bn_scale, bn_bias

    k1, k2 = jax.random.split(key)

    # Case 1: nominal small shape (B=2, C=16, 16x16, 2 inputs), auto tiling.
    args1 = make_case(k1, B=2, C=16, H=16, W=16, n=2)
    ref1 = reference(*args1, eps=1e-4)

    out = jax.block_until_ready(weighted_feature_fusion(*args1, eps=1e-4))
    np.testing.assert_allclose(np.asarray(out), np.asarray(ref1),
                               rtol=1e-4, atol=1e-4)

    # Same case with a forced 8-row tile (exercises the overlapping-halo
    # row-tiling path across two row tiles).
    out = jax.block_until_ready(
        weighted_feature_fusion(*args1, eps=1e-4, row_tile=8))
    np.testing.assert_allclose(np.asarray(out), np.asarray(ref1),
                               rtol=1e-4, atol=1e-4)

    # Same case with the bf16 MXU feed (f32 accumulation) enabled.
    out = jax.block_until_ready(
        weighted_feature_fusion(*args1, eps=1e-4, mxu_bf16=True))
    np.testing.assert_allclose(np.asarray(out), np.asarray(ref1),
                               rtol=2e-2, atol=2e-3)

    # Case 2: odd height, width not a multiple of 8, three inputs, batch 1
    # (exercises H/W alignment padding, variable num_inputs, multi-row grid).
    args2 = make_case(k2, B=1, C=8, H=9, W=12, n=3)
    ref2 = reference(*args2, eps=1e-4)
    out = jax.block_until_ready(weighted_feature_fusion(*args2, eps=1e-4))
    np.testing.assert_allclose(np.asarray(out), np.asarray(ref2),
                               rtol=1e-4, atol=1e-4)

    print("KERNEL_OK")
</pallas_src>

<mosaic_0001>
module attributes {stable_mosaic.version = 11 : i64} {
  func.func @wff_kernel(%arg0: i32, %arg1: i32, %arg2: memref<2xf32, #tpu.memory_space<smem>>, %arg3: memref<1x16x18x16xf32, #tpu.memory_space<vmem>>, %arg4: memref<1x2x18x16xf32, #tpu.memory_space<vmem>>, %arg5: memref<1x16x18x16xf32, #tpu.memory_space<vmem>>, %arg6: memref<1x2x18x16xf32, #tpu.memory_space<vmem>>, %arg7: memref<3x3x16xf32, #tpu.memory_space<vmem>>, %arg8: memref<16x16xf32, #tpu.memory_space<vmem>>, %arg9: memref<1x16xf32, #tpu.memory_space<vmem>>, %arg10: memref<1x16x16x16xf32, #tpu.memory_space<vmem>>, %arg11: memref<1x18x18x16xf32, #tpu.memory_space<vmem>>) attributes {dimension_semantics = [#tpu.dimension_semantics<parallel>, #tpu.dimension_semantics<parallel>], iteration_bounds = array<i64: 2, 1>, scalar_prefetch = 0 : i64, scratch_operands = 1 : i64, tpu.core_type = #tpu.core_type<tc>, window_params = [{transform_indices = @transform_0, window_bounds = array<i64: 2>}, {transform_indices = @transform_1, window_bounds = array<i64: 1, 16, 18, 16>}, {transform_indices = @transform_2, window_bounds = array<i64: 1, 2, 18, 16>}, {transform_indices = @transform_3, window_bounds = array<i64: 1, 16, 18, 16>}, {transform_indices = @transform_4, window_bounds = array<i64: 1, 2, 18, 16>}, {pipeline_mode = #tpu.pipeline_mode<synchronous>, transform_indices = @transform_5, window_bounds = array<i64: 3, 3, 16>}, {pipeline_mode = #tpu.pipeline_mode<synchronous>, transform_indices = @transform_6, window_bounds = array<i64: 16, 16>}, {pipeline_mode = #tpu.pipeline_mode<synchronous>, transform_indices = @transform_7, window_bounds = array<i64: 1, 16>}, {transform_indices = @transform_8, window_bounds = array<i64: 1, 16, 16, 16>}]} {
    %c0 = arith.constant 0 : index
    %0 = memref.load %arg2[%c0] : memref<2xf32, #tpu.memory_space<smem>>
    %cst = arith.constant 0.000000e+00 : f32
    %1 = arith.maximumf %0, %cst : f32
    %c1 = arith.constant 1 : index
    %2 = memref.load %arg2[%c1] : memref<2xf32, #tpu.memory_space<smem>>
    %cst_0 = arith.constant 0.000000e+00 : f32
    %3 = arith.maximumf %2, %cst_0 : f32
    %4 = arith.addf %1, %3 : f32
    %cst_1 = arith.constant 9.99999974E-5 : f32
    %5 = arith.addf %4, %cst_1 : f32
    %cst_2 = arith.constant 1.000000e+00 : f32
    %6 = arith.divf %cst_2, %5 : f32
    %c0_3 = arith.constant 0 : index
    %c0_4 = arith.constant 0 : index
    %c0_5 = arith.constant 0 : index
    %c0_6 = arith.constant 0 : index
    %7 = vector.load %arg3[%c0_3, %c0_4, %c0_5, %c0_6] : memref<1x16x18x16xf32, #tpu.memory_space<vmem>>, vector<1x16x18x16xf32>
    %8 = arith.mulf %1, %6 : f32
    %9 = vector.broadcast %8 : f32 to vector<1x16x18x16xf32>
    %10 = arith.mulf %7, %9 : vector<1x16x18x16xf32>
    %c0_7 = arith.constant 0 : index
    %c0_8 = arith.constant 0 : index
    %c0_9 = arith.constant 0 : index
    %c0_10 = arith.constant 0 : index
    %11 = vector.load %arg4[%c0_7, %c0_8, %c0_9, %c0_10] : memref<1x2x18x16xf32, #tpu.memory_space<vmem>>, vector<1x2x18x16xf32>
    %12 = arith.mulf %1, %6 : f32
    %13 = vector.broadcast %12 : f32 to vector<1x2x18x16xf32>
    %14 = arith.mulf %11, %13 : vector<1x2x18x16xf32>
    %c0_11 = arith.constant 0 : index
    %c0_12 = arith.constant 0 : index
    %c0_13 = arith.constant 0 : index
    %c0_14 = arith.constant 0 : index
    %15 = vector.load %arg5[%c0_11, %c0_12, %c0_13, %c0_14] : memref<1x16x18x16xf32, #tpu.memory_space<vmem>>, vector<1x16x18x16xf32>
    %16 = arith.mulf %3, %6 : f32
    %17 = vector.broadcast %16 : f32 to vector<1x16x18x16xf32>
    %18 = arith.mulf %15, %17 : vector<1x16x18x16xf32>
    %19 = arith.addf %10, %18 : vector<1x16x18x16xf32>
    %c0_15 = arith.constant 0 : index
    %c0_16 = arith.constant 0 : index
    %c0_17 = arith.constant 0 : index
    %c0_18 = arith.constant 0 : index
    %20 = vector.load %arg6[%c0_15, %c0_16, %c0_17, %c0_18] : memref<1x2x18x16xf32, #tpu.memory_space<vmem>>, vector<1x2x18x16xf32>
    %21 = arith.mulf %3, %6 : f32
    %22 = vector.broadcast %21 : f32 to vector<1x2x18x16xf32>
    %23 = arith.mulf %20, %22 : vector<1x2x18x16xf32>
    %24 = arith.addf %14, %23 : vector<1x2x18x16xf32>
    %c0_19 = arith.constant 0 : index
    %c0_20 = arith.constant 0 : index
    %c0_21 = arith.constant 0 : index
    %c0_22 = arith.constant 0 : index
    %25 = vector.load %arg11[%c0_19, %c0_20, %c0_21, %c0_22] : memref<1x18x18x16xf32, #tpu.memory_space<vmem>>, vector<1x16x18x16xf32>
    tpu.vector_store %arg11[%c0_19, %c0_20, %c0_21, %c0_22], %19 {strides = array<i32>} : memref<1x18x18x16xf32, #tpu.memory_space<vmem>>, vector<1x16x18x16xf32>,
    %c0_23 = arith.constant 0 : index
    %c16 = arith.constant 16 : index
    %c0_24 = arith.constant 0 : index
    %c0_25 = arith.constant 0 : index
    %26 = vector.load %arg11[%c0_23, %c16, %c0_24, %c0_25] : memref<1x18x18x16xf32, #tpu.memory_space<vmem>>, vector<1x2x18x16xf32>
    tpu.vector_store %arg11[%c0_23, %c16, %c0_24, %c0_25], %24 {strides = array<i32>} : memref<1x18x18x16xf32, #tpu.memory_space<vmem>>, vector<1x2x18x16xf32>,
    %c0_26 = arith.constant 0 : index
    %c0_27 = arith.constant 0 : index
    %c0_28 = arith.constant 0 : index
    %c0_29 = arith.constant 0 : index
    %27 = vector.load %arg11[%c0_26, %c0_27, %c0_28, %c0_29] : memref<1x18x18x16xf32, #tpu.memory_space<vmem>>, vector<1x16x16x16xf32>
    %c0_30 = arith.constant 0 : index
    %c0_31 = arith.constant 0 : index
    %c0_32 = arith.constant 0 : index
    %28 = vector.load %arg7[%c0_30, %c0_31, %c0_32] : memref<3x3x16xf32, #tpu.memory_space<vmem>>, vector<1x1x16xf32>
    %29 = vector.shape_cast %28 : vector<1x1x16xf32> to vector<16xf32>
    %30 = vector.shape_cast %29 : vector<16xf32> to vector<1x1x1x16xf32>
    %31 = vector.broadcast %30 : vector<1x1x1x16xf32> to vector<1x16x16x16xf32>
    %32 = arith.mulf %27, %31 : vector<1x16x16x16xf32>
    %c0_33 = arith.constant 0 : index
    %c0_34 = arith.constant 0 : index
    %c1_35 = arith.constant 1 : index
    %c0_36 = arith.constant 0 : index
    %33 = vector.load %arg11[%c0_33, %c0_34, %c1_35, %c0_36] : memref<1x18x18x16xf32, #tpu.memory_space<vmem>>, vector<1x16x16x16xf32>
    %c0_37 = arith.constant 0 : index
    %c1_38 = arith.constant 1 : index
    %c0_39 = arith.constant 0 : index
    %34 = vector.load %arg7[%c0_37, %c1_38, %c0_39] : memref<3x3x16xf32, #tpu.memory_space<vmem>>, vector<1x1x16xf32>
    %35 = vector.shape_cast %34 : vector<1x1x16xf32> to vector<16xf32>
    %36 = vector.shape_cast %35 : vector<16xf32> to vector<1x1x1x16xf32>
    %37 = vector.broadcast %36 : vector<1x1x1x16xf32> to vector<1x16x16x16xf32>
    %38 = arith.mulf %33, %37 : vector<1x16x16x16xf32>
    %39 = arith.addf %32, %38 : vector<1x16x16x16xf32>
    %c0_40 = arith.constant 0 : index
    %c0_41 = arith.constant 0 : index
    %c2 = arith.constant 2 : index
    %c0_42 = arith.constant 0 : index
    %40 = vector.load %arg11[%c0_40, %c0_41, %c2, %c0_42] : memref<1x18x18x16xf32, #tpu.memory_space<vmem>>, vector<1x16x16x16xf32>
    %c0_43 = arith.constant 0 : index
    %c2_44 = arith.constant 2 : index
    %c0_45 = arith.constant 0 : index
    %41 = vector.load %arg7[%c0_43, %c2_44, %c0_45] : memref<3x3x16xf32, #tpu.memory_space<vmem>>, vector<1x1x16xf32>
    %42 = vector.shape_cast %41 : vector<1x1x16xf32> to vector<16xf32>
    %43 = vector.shape_cast %42 : vector<16xf32> to vector<1x1x1x16xf32>
    %44 = vector.broadcast %43 : vector<1x1x1x16xf32> to vector<1x16x16x16xf32>
    %45 = arith.mulf %40, %44 : vector<1x16x16x16xf32>
    %46 = arith.addf %39, %45 : vector<1x16x16x16xf32>
    %c0_46 = arith.constant 0 : index
    %c1_47 = arith.constant 1 : index
    %c0_48 = arith.constant 0 : index
    %c0_49 = arith.constant 0 : index
    %47 = vector.load %arg11[%c0_46, %c1_47, %c0_48, %c0_49] : memref<1x18x18x16xf32, #tpu.memory_space<vmem>>, vector<1x16x16x16xf32>
    %c1_50 = arith.constant 1 : index
    %c0_51 = arith.constant 0 : index
    %c0_52 = arith.constant 0 : index
    %48 = vector.load %arg7[%c1_50, %c0_51, %c0_52] : memref<3x3x16xf32, #tpu.memory_space<vmem>>, vector<1x1x16xf32>
    %49 = vector.shape_cast %48 : vector<1x1x16xf32> to vector<16xf32>
    %50 = vector.shape_cast %49 : vector<16xf32> to vector<1x1x1x16xf32>
    %51 = vector.broadcast %50 : vector<1x1x1x16xf32> to vector<1x16x16x16xf32>
    %52 = arith.mulf %47, %51 : vector<1x16x16x16xf32>
    %53 = arith.addf %46, %52 : vector<1x16x16x16xf32>
    %c0_53 = arith.constant 0 : index
    %c1_54 = arith.constant 1 : index
    %c1_55 = arith.constant 1 : index
    %c0_56 = arith.constant 0 : index
    %54 = vector.load %arg11[%c0_53, %c1_54, %c1_55, %c0_56] : memref<1x18x18x16xf32, #tpu.memory_space<vmem>>, vector<1x16x16x16xf32>
    %c1_57 = arith.constant 1 : index
    %c1_58 = arith.constant 1 : index
    %c0_59 = arith.constant 0 : index
    %55 = vector.load %arg7[%c1_57, %c1_58, %c0_59] : memref<3x3x16xf32, #tpu.memory_space<vmem>>, vector<1x1x16xf32>
    %56 = vector.shape_cast %55 : vector<1x1x16xf32> to vector<16xf32>
    %57 = vector.shape_cast %56 : vector<16xf32> to vector<1x1x1x16xf32>
    %58 = vector.broadcast %57 : vector<1x1x1x16xf32> to vector<1x16x16x16xf32>
    %59 = arith.mulf %54, %58 : vector<1x16x16x16xf32>
    %60 = arith.addf %53, %59 : vector<1x16x16x16xf32>
    %c0_60 = arith.constant 0 : index
    %c1_61 = arith.constant 1 : index
    %c2_62 = arith.constant 2 : index
    %c0_63 = arith.constant 0 : index
    %61 = vector.load %arg11[%c0_60, %c1_61, %c2_62, %c0_63] : memref<1x18x18x16xf32, #tpu.memory_space<vmem>>, vector<1x16x16x16xf32>
    %c1_64 = arith.constant 1 : index
    %c2_65 = arith.constant 2 : index
    %c0_66 = arith.constant 0 : index
    %62 = vector.load %arg7[%c1_64, %c2_65, %c0_66] : memref<3x3x16xf32, #tpu.memory_space<vmem>>, vector<1x1x16xf32>
    %63 = vector.shape_cast %62 : vector<1x1x16xf32> to vector<16xf32>
    %64 = vector.shape_cast %63 : vector<16xf32> to vector<1x1x1x16xf32>
    %65 = vector.broadcast %64 : vector<1x1x1x16xf32> to vector<1x16x16x16xf32>
    %66 = arith.mulf %61, %65 : vector<1x16x16x16xf32>
    %67 = arith.addf %60, %66 : vector<1x16x16x16xf32>
    %c0_67 = arith.constant 0 : index
    %c2_68 = arith.constant 2 : index
    %c0_69 = arith.constant 0 : index
    %c0_70 = arith.constant 0 : index
    %68 = vector.load %arg11[%c0_67, %c2_68, %c0_69, %c0_70] : memref<1x18x18x16xf32, #tpu.memory_space<vmem>>, vector<1x16x16x16xf32>
    %c2_71 = arith.constant 2 : index
    %c0_72 = arith.constant 0 : index
    %c0_73 = arith.constant 0 : index
    %69 = vector.load %arg7[%c2_71, %c0_72, %c0_73] : memref<3x3x16xf32, #tpu.memory_space<vmem>>, vector<1x1x16xf32>
    %70 = vector.shape_cast %69 : vector<1x1x16xf32> to vector<16xf32>
    %71 = vector.shape_cast %70 : vector<16xf32> to vector<1x1x1x16xf32>
    %72 = vector.broadcast %71 : vector<1x1x1x16xf32> to vector<1x16x16x16xf32>
    %73 = arith.mulf %68, %72 : vector<1x16x16x16xf32>
    %74 = arith.addf %67, %73 : vector<1x16x16x16xf32>
    %c0_74 = arith.constant 0 : index
    %c2_75 = arith.constant 2 : index
    %c1_76 = arith.constant 1 : index
    %c0_77 = arith.constant 0 : index
    %75 = vector.load %arg11[%c0_74, %c2_75, %c1_76, %c0_77] : memref<1x18x18x16xf32, #tpu.memory_space<vmem>>, vector<1x16x16x16xf32>
    %c2_78 = arith.constant 2 : index
    %c1_79 = arith.constant 1 : index
    %c0_80 = arith.constant 0 : index
    %76 = vector.load %arg7[%c2_78, %c1_79, %c0_80] : memref<3x3x16xf32, #tpu.memory_space<vmem>>, vector<1x1x16xf32>
    %77 = vector.shape_cast %76 : vector<1x1x16xf32> to vector<16xf32>
    %78 = vector.shape_cast %77 : vector<16xf32> to vector<1x1x1x16xf32>
    %79 = vector.broadcast %78 : vector<1x1x1x16xf32> to vector<1x16x16x16xf32>
    %80 = arith.mulf %75, %79 : vector<1x16x16x16xf32>
    %81 = arith.addf %74, %80 : vector<1x16x16x16xf32>
    %c0_81 = arith.constant 0 : index
    %c2_82 = arith.constant 2 : index
    %c2_83 = arith.constant 2 : index
    %c0_84 = arith.constant 0 : index
    %82 = vector.load %arg11[%c0_81, %c2_82, %c2_83, %c0_84] : memref<1x18x18x16xf32, #tpu.memory_space<vmem>>, vector<1x16x16x16xf32>
    %c2_85 = arith.constant 2 : index
    %c2_86 = arith.constant 2 : index
    %c0_87 = arith.constant 0 : index
    %83 = vector.load %arg7[%c2_85, %c2_86, %c0_87] : memref<3x3x16xf32, #tpu.memory_space<vmem>>, vector<1x1x16xf32>
    %84 = vector.shape_cast %83 : vector<1x1x16xf32> to vector<16xf32>
    %85 = vector.shape_cast %84 : vector<16xf32> to vector<1x1x1x16xf32>
    %86 = vector.broadcast %85 : vector<1x1x1x16xf32> to vector<1x16x16x16xf32>
    %87 = arith.mulf %82, %86 : vector<1x16x16x16xf32>
    %88 = arith.addf %81, %87 : vector<1x16x16x16xf32>
    %89 = vector.shape_cast %88 : vector<1x16x16x16xf32> to vector<256x16xf32>
    %c0_88 = arith.constant 0 : index
    %c0_89 = arith.constant 0 : index
    %90 = vector.load %arg8[%c0_88, %c0_89] : memref<16x16xf32, #tpu.memory_space<vmem>>, vector<16x16xf32>
    %cst_90 = arith.constant dense<0.000000e+00> : vector<256x16xf32>
    %91 = tpu.matmul %89, %90, %cst_90 {dimension_numbers = #tpu.dot_dimension_numbers<[1], [0], [0], [1], [0, 0, 1, 1], [], []>} : vector<256x16xf32>, vector<16x16xf32>, vector<256x16xf32> -> vector<256x16xf32>
    %c0_91 = arith.constant 0 : index
    %c0_92 = arith.constant 0 : index
    %92 = vector.load %arg9[%c0_91, %c0_92] : memref<1x16xf32, #tpu.memory_space<vmem>>, vector<1x16xf32>
    %93 = vector.broadcast %92 : vector<1x16xf32> to vector<256x16xf32>
    %94 = arith.addf %91, %93 : vector<256x16xf32>
    %cst_93 = arith.constant 0.000000e+00 : f32
    %95 = vector.broadcast %cst_93 : f32 to vector<256x16xf32>
    %96 = arith.maximumf %94, %95 : vector<256x16xf32>
    %97 = vector.shape_cast %96 : vector<256x16xf32> to vector<1x16x16x16xf32>
    %c0_94 = arith.constant 0 : index
    %c0_95 = arith.constant 0 : index
    %c0_96 = arith.constant 0 : index
    %c0_97 = arith.constant 0 : index
    %98 = vector.load %arg10[%c0_94, %c0_95, %c0_96, %c0_97] : memref<1x16x16x16xf32, #tpu.memory_space<vmem>>, vector<1x16x16x16xf32>
    tpu.vector_store %arg10[%c0_94, %c0_95, %c0_96, %c0_97], %97 {strides = array<i32>} : memref<1x16x16x16xf32, #tpu.memory_space<vmem>>, vector<1x16x16x16xf32>,
    return
  }
  func.func @transform_0(%arg0: i32, %arg1: i32) -> i32 {
    %c0_i32 = arith.constant 0 : i32
    %c0_i32_0 = arith.constant 0 : i32
    return %c0_i32 : i32
  }
  func.func @transform_1(%arg0: i32, %arg1: i32) -> (i32, i32, i32, i32) {
    %c0_i32 = arith.constant 0 : i32
    %c0_i32_0 = arith.constant 0 : i32
    %c0_i32_1 = arith.constant 0 : i32
    return %arg0, %arg1, %c0_i32, %c0_i32_0 : i32, i32, i32, i32
  }
  func.func @transform_2(%arg0: i32, %arg1: i32) -> (i32, i32, i32, i32) {
    %c1_i32 = arith.constant 1 : i32
    %0 = arith.addi %arg1, %c1_i32 : i32
    %c8_i32 = arith.constant 8 : i32
    %1 = arith.muli %0, %c8_i32 : i32
    %c0_i32 = arith.constant 0 : i32
    %c0_i32_0 = arith.constant 0 : i32
    %c0_i32_1 = arith.constant 0 : i32
    return %arg0, %1, %c0_i32, %c0_i32_0 : i32, i32, i32, i32
  }
  func.func @transform_3(%arg0: i32, %arg1: i32) -> (i32, i32, i32, i32) {
    %c0_i32 = arith.constant 0 : i32
    %c0_i32_0 = arith.constant 0 : i32
    %c0_i32_1 = arith.constant 0 : i32
    return %arg0, %arg1, %c0_i32, %c0_i32_0 : i32, i32, i32, i32
  }
  func.func @transform_4(%arg0: i32, %arg1: i32) -> (i32, i32, i32, i32) {
    %c1_i32 = arith.constant 1 : i32
    %0 = arith.addi %arg1, %c1_i32 : i32
    %c8_i32 = arith.constant 8 : i32
    %1 = arith.muli %0, %c8_i32 : i32
    %c0_i32 = arith.constant 0 : i32
    %c0_i32_0 = arith.constant 0 : i32
    %c0_i32_1 = arith.constant 0 : i32
    return %arg0, %1, %c0_i32, %c0_i32_0 : i32, i32, i32, i32
  }
  func.func @transform_5(%arg0: i32, %arg1: i32) -> (i32, i32, i32) {
    %c0_i32 = arith.constant 0 : i32
    %c0_i32_0 = arith.constant 0 : i32
    %c0_i32_1 = arith.constant 0 : i32
    %c0_i32_2 = arith.constant 0 : i32
    return %c0_i32, %c0_i32_0, %c0_i32_1 : i32, i32, i32
  }
  func.func @transform_6(%arg0: i32, %arg1: i32) -> (i32, i32) {
    %c0_i32 = arith.constant 0 : i32
    %c0_i32_0 = arith.constant 0 : i32
    %c0_i32_1 = arith.constant 0 : i32
    return %c0_i32, %c0_i32_0 : i32, i32
  }
  func.func @transform_7(%arg0: i32, %arg1: i32) -> (i32, i32) {
    %c0_i32 = arith.constant 0 : i32
    %c0_i32_0 = arith.constant 0 : i32
    %c0_i32_1 = arith.constant 0 : i32
    return %c0_i32, %c0_i32_0 : i32, i32
  }
  func.func @transform_8(%arg0: i32, %arg1: i32) -> (i32, i32, i32, i32) {
    %c0_i32 = arith.constant 0 : i32
    %c0_i32_0 = arith.constant 0 : i32
    %c0_i32_1 = arith.constant 0 : i32
    return %arg0, %arg1, %c0_i32, %c0_i32_0 : i32, i32, i32, i32
  }
}

</mosaic_0001>

<bundles_post_ra>
// kernel: tpu_custom_call.1
= control target key start
LH: loop header
LB: loop body
LE: loop exit
PB: predicated region body
PF: predicated region fallthrough
CT: control target
= control target key end

     0   :  { %s4172_s0 = inlined_call_operand.vmem [shape: f32[2], index: 0, kind: input, shape index: {}]   ;;  %s4173_s1 = inlined_call_operand.vmem [shape: f32[2,18,18,16], index: 1, kind: input, shape index: {}]   ;;  %s4174_s2 = inlined_call_operand.vmem [shape: f32[2,18,18,16], index: 2, kind: input, shape index: {}]   ;;  %s4175_s3 = inlined_call_operand.vmem [shape: f32[2,18,18,16], index: 3, kind: input, shape index: {}]   ;;  %s4176_s4 = inlined_call_operand.vmem [shape: f32[2,18,18,16], index: 4, kind: input, shape index: {}]   ;;  %s4177_s5 = inlined_call_operand.vmem [shape: f32[3,3,16], index: 5, kind: input, shape index: {}]   ;;  %s4178_s6 = inlined_call_operand.vmem [shape: f32[16,16], index: 6, kind: input, shape index: {}]   ;;  %s4179_s7 = inlined_call_operand.vmem [shape: f32[1,16], index: 7, kind: input, shape index: {}]   ;;  %s4180_s8 = inlined_call_operand.hbm [shape: f32[2,16,16,16], index: 8, kind: output, shape index: {}]  }
   0x1   :  { %4189 = sst [smem:[#allocation14_spill]] %s4172_s0 }
   0x2   :  { %4190 = sst [smem:[#allocation15_spill]] %s4178_s6 }
   0x3   :  { %13 = vsyncpa [#allocation5], 0 }
   0x4   :  { %14 = vsyncpa [#allocation4], 0 }
   0x5   :  { %16 = vsyncpa [#allocation4 + $0x1], 0  ;;  %s2733_s27 = smov 0   ;;  %s2735_s28 = smov 0  }
   0x6   :  { %s2737_s29 = smov 0   ;;  %s2739_s30 = smov 0  }
   0x7   :  { %s2741_s9 = smov 0   ;;  %s2743_s10 = smov 0  }
   0x8 LB: > { %s2336_s11 = sadd.s32 4294967295, %s2681_s10   ;;  %s2337_s12 = sadd.s32 4294967294, %s2681_s10   ;;  %s2681_s10 = sphi %s2743_s10, %s22_s10   ;;  %s2677_s9 = sphi %s2741_s9, %s4211_s9   ;;  %s2673_s30 = sphi %s2739_s30, %s4210_s30   ;;  %s2669_s29 = sphi %s2737_s29, %s4209_s29   ;;  %s2665_s28 = sphi %s2735_s28, %s4208_s28   ;;  %s2661_s27 = sphi %s2733_s27, %s4207_s27  }
   0x9   : > { %s34_s13 = sadd.s32 1, %s2677_s9  ;;  %s247_s14 = sadd.s32 1, %s2669_s29 }
   0xa   : > { %p36_p0 = scmp.ge.s32.totalorder %s34_s13, 2  ;;  %p257_p1 = scmp.ne.s32.totalorder %s2669_s29, %s2665_s28 }
   0xb   : > { %p258_p2 = scmp.eq.s32.totalorder %s2336_s11, 1  ;;  %p263_p3 = scmp.ne.s32.totalorder %s2665_s28, %s2661_s27 }
   0xc   : > { %s4213_s13 = smov (%p36_p0, %s34_s13), 0  ;;  %p264_p5 = scmp.eq.s32.totalorder %s2337_s12, 1 }
   0xd   : > { %p2773_p4 = por %p258_p2, %p257_p1  ;;  %s242_s16 = ssub.s32 %s2677_s9, %s4213_s13 }
   0xe   : > { %p2338_p6 = scmp.ge.s32.totalorder %s2681_s10, 1  ;;  %p245_p7 = scmp.eq.s32.totalorder %s242_s16, 0 }
   0xf   : > { %p2780_p8 = por %p264_p5, %p263_p3  ;;  %p271_p9 = scmp.lt.s32.totalorder %s2681_s10, 3 }
  0x10   : > { %s2786_s18 = scalar_select %p245_p7, %s2669_s29, %s247_s14  }
  0x11   : > { %p2788_p10 = pnand %p2338_p6, %p271_p9  ;;  %p2792_p11 = scmp.eq.s32.totalorder %s2336_s11, 0 }
  0x12   : > { %s4195_s0 = sld [smem:[#allocation14_spill]] }
  0x13   : > { %p2509_p12 = pneg %p2788_p10 }
  0x15   : > { %p2510_p13 = pnand %p2792_p11, %p2509_p12 }
  0x17   : > { %p2586_p1 = pneg %p2510_p13 }
  0x18   : > { %s284_s23 = sshll.u32 %s4195_s0, 4  ;;  %s285_s23 = int_to_ptr.vmem [resolvable:$true] %s284_s23 }
  0x19   : > { %s2584_s24 = scalar_lea.vmem %s285_s23, 16  ;;  %p2592_p5 = scmp.lt.s32.totalorder %s285_s23, %s285_s23 }
  0x1a   : > { %p2585_p0 = scmp.ne.s32.totalorder %s285_s23, %s2584_s24  ;;  %p2593_p6 = scmp.lt.s32.totalorder %s2584_s24, %s2584_s24 }
  0x1c   : > { %p2587_p2 = pnand %p2586_p1, %p2585_p0  ;;  %p2594_p7 = por %p2593_p6, %p2592_p5 }
  0x1e   : > { %p2588_p3 = pneg %p2587_p2 }
  0x20   : > { %p2595_p9 = pnand %p2594_p7, %p2588_p3 }
  0x22   : > { %2598 = shalt.err (!%p2595_p9)
}
  0x23   : > { %s2683_s25 = smov [#allocation3]   ;;  %390 = sbr.rel (%p2788_p10) target bundleno = 544 (0x220), region = 52 }
  0x24   : > { %2512 = dma.vmem_to_smem (!%p2510_p13), %s285_s23, 16, %s2683_s25, [#allocation5]  }
  0x2a   : > { %2652 = dma.done.wait (%p2792_p11), [#allocation5], 16  }
  0x2b   : > { %2654 = vsyncadd (%p2792_p11), [#allocation5], 4294967280 }
  0x2c   : > { %396 = sfence }
  0x2d   : > { %s547_s26 = sld [smem:[#allocation3]]  ;;  %s4196_s6 = sld [smem:[#allocation15_spill]]  ;;  %vm830_vm0 = vcmask 130048   ;;  %vm833_vm1 = vcmask 123904  }
  0x2e   : > { %s2348_s19 = sld [smem:[#allocation3 + $0x1]]  ;;  %p480_p10 = scmp.lt.s32.totalorder %s2673_s30, 1 }
  0x2f   : > { %s2684_s21 = smov 0.0   ;;  %s471_s14 = sand.u32 1, %s2665_s28  }
  0x30   : > { %s481_s20 = scalar_select %p480_p10, %s2673_s30, 1 }
  0x32   : > { %s2817_s11 = smul.u32 432, %s481_s20 }
  0x33   : > { %v1768_v0 = vld [vmem:[%s4196_s6] sm:$0xff]  ;;  %v1769_v1 = vld [vmem:[%s4196_s6 + $0x8] sm:$0xff]  ;;  %s548_s22 = smax.f32 %s2684_s21, %s547_s26 }
  0x34   : > { %v2493_v2 = vpack.c.bf16 %v1769_v1, %v1768_v0  ;;  %s550_s23 = smax.f32 %s2684_s21, %s2348_s19  ;;  %s2823_s16 = scalar_lea.vmem %s4173_s1, %s2817_s11 }
  0x35   : > { %s551_s24 = sadd.f32 %s550_s23, %s548_s22  ;;  %s2829_s26 = scalar_lea.vmem %s4175_s3, %s2817_s11  ;;  %v556_v5 = vld [vmem:[%s2823_s16] sm:$0xff]  ;;  %v557_v6 = vld [vmem:[%s2823_s16 + $0x8] sm:$0xff]  ;;  %v559_v7 = vld [vmem:[%s2823_s16 + $0x18] sm:$0xff] }
  0x36   : > { %2494 = vmatprep.subr.bf16.mxu0 %v2493_v2  ;;  %2497 = vmatprep.subr.bf16.mxu1 %v2493_v2  ;;  %v560_v8 = vld [vmem:[%s2823_s16 + $0x20] sm:$0xff]  ;;  %v562_v9 = vld [vmem:[%s2823_s16 + $0x30] sm:$0xff]  ;;  %v563_v10 = vld [vmem:[%s2823_s16 + $0x38] sm:$0xff]  ;;  %s2406_s21 = sshll.u32 %s2673_s30, 12  ;;  %s4126_s30 = scalar_lea.sflag [#allocation4], %s471_s14 }
  0x37   : > { %2496 = vmatpush3.bf16.msra.mxu0 %v2493_v2  ;;  %2498 = vmatpush3.bf16.msra.mxu1 %v2493_v2  ;;  %s552_s25 = sadd.f32 0.0001, %s551_s24  ;;  %v666_v11 = vld [vmem:[%s2829_s26] sm:$0xff]  ;;  %v667_v12 = vld [vmem:[%s2829_s26 + $0x8] sm:$0xff]  ;;  %v669_v14 = vld [vmem:[%s2829_s26 + $0x18] sm:$0xff]  ;;  %s2685_s24 = smov [#allocation6]  }
  0x38   : > { %v670_v15 = vld [vmem:[%s2829_s26 + $0x20] sm:$0xff]  ;;  %v672_v16 = vld [vmem:[%s2829_s26 + $0x30] sm:$0xff]  ;;  %v673_v21 = vld [vmem:[%s2829_s26 + $0x38] sm:$0xff] }
  0x39   : > { %v553_v3 = vstv %s552_s25  ;;  %v580_v22 = vld [vmem:[%s2823_s16 + $0xc0] sm:$0xff]  ;;  %v581_v23 = vld [vmem:[%s2823_s16 + $0xc8] sm:$0xff]  ;;  %v583_v28 = vld [vmem:[%s2823_s16 + $0xd8] sm:$0xff]  ;;  %s2603_s25 = sshll.u32 %s2685_s24, 4  ;;  %s2604_s25 = int_to_ptr.vmem [resolvable:$false] %s2603_s25 }
  0x3a   : > { %2573 = vrcp.f32 %v553_v3  ;;  %v584_v29 = vld [vmem:[%s2823_s16 + $0xe0] sm:$0xff]  ;;  %v586_v34 = vld [vmem:[%s2823_s16 + $0xf0] sm:$0xff]  ;;  %v587_v35 = vld [vmem:[%s2823_s16 + $0xf8] sm:$0xff] }
  0x3b   : > { %v690_v36 = vld [vmem:[%s2829_s26 + $0xc0] sm:$0xff]  ;;  %v691_v41 = vld [vmem:[%s2829_s26 + $0xc8] sm:$0xff]  ;;  %v693_v42 = vld [vmem:[%s2829_s26 + $0xd8] sm:$0xff] }
  0x3c   : > { %v694_v43 = vld [vmem:[%s2829_s26 + $0xe0] sm:$0xff]  ;;  %v696_v48 = vld [vmem:[%s2829_s26 + $0xf0] sm:$0xff]  ;;  %v697_v49 = vld [vmem:[%s2829_s26 + $0xf8] sm:$0xff] }
  0x3d   : > { %v558_v50 = vld [vmem:[%s2823_s16 + $0x10] sm:$0x3]  ;;  %v561_v55 = vld [vmem:[%s2823_s16 + $0x28] sm:$0x3]  ;;  %v564_v60 = vld [vmem:[%s2823_s16 + $0x40] sm:$0x3] }
  0x3e   : > { %v668_v61 = vld [vmem:[%s2829_s26 + $0x10] sm:$0x3]  ;;  %v671_v62 = vld [vmem:[%s2829_s26 + $0x28] sm:$0x3]  ;;  %v674_v3 = vld [vmem:[%s2829_s26 + $0x40] sm:$0x3] }
  0x44   : > { %v2574_v4 = vpop.eup %2573 }
  0x45   : > { %2501 = vpush %v2574_v4  ;;  %v582_v4 = vld [vmem:[%s2823_s16 + $0xd0] sm:$0x3] }
  0x76   : > { %s2502_s19 = spop %2501 }
  0x77   : > { %s604_s20 = smul.f32 %s2502_s19, %s548_s22 }
  0x78   : > { %s714_s0 = smul.f32 %s2502_s19, %s550_s23 }
  0x79   : > { %v2839_v13 = vstv %s604_s20 }
  0x7a   : > { %v2844_v17 = vstv %s714_s0  ;;  %v606_v18 = vmul.f32 %v2839_v13, %v556_v5  ;;  %v607_v19 = vmul.f32 %v2839_v13, %v557_v6  ;;  %v609_v20 = vmul.f32 %v2839_v13, %v559_v7  ;;  %v585_v5 = vld [vmem:[%s2823_s16 + $0xe8] sm:$0x3]  ;;  %s2343_s0 = sshll.u32 %s471_s14, 8 }
  0x7b   : > { %v610_v24 = vmul.f32 %v2839_v13, %v560_v8  ;;  %v612_v25 = vmul.f32 %v2839_v13, %v562_v9  ;;  %v613_v26 = vmul.f32 %v2839_v13, %v563_v10  ;;  %v716_v27 = vmul.f32 %v2844_v17, %v666_v11  ;;  %v588_v10 = vld [vmem:[%s2823_s16 + $0x100] sm:$0x3]  ;;  %v692_v11 = vld [vmem:[%s2829_s26 + $0xd0] sm:$0x3]  ;;  %s4021_s6 = scalar_lea.vmem [#allocation6], %s2343_s0 }
  0x7c   : > { %v717_v30 = vmul.f32 %v2844_v17, %v667_v12  ;;  %v719_v31 = vmul.f32 %v2844_v17, %v669_v14  ;;  %v720_v32 = vmul.f32 %v2844_v17, %v670_v15  ;;  %v722_v33 = vmul.f32 %v2844_v17, %v672_v16  ;;  %v695_v12 = vld [vmem:[%s2829_s26 + $0xe8] sm:$0x3]  ;;  %v2905_v14 = vld [vmem:[%s4177_s5] ss:$0 sm:$0xff]  ;;  %v2910_v15 = vld [vmem:[%s4177_s5 + $0x1] ss:$0 sm:$0xff] }
  0x7d   : > { %v723_v37 = vmul.f32 %v2844_v17, %v673_v21  ;;  %v764_v38 = vadd.f32 %v716_v27, %v606_v18  ;;  %v630_v39 = vmul.f32 %v2839_v13, %v580_v22  ;;  %v631_v40 = vmul.f32 %v2839_v13, %v581_v23  ;;  %v698_v21 = vld [vmem:[%s2829_s26 + $0x100] sm:$0x3]  ;;  %v2917_v22 = vld [vmem:[%s4177_s5 + $0x2] ss:$0 sm:$0xff]  ;;  %v2922_v23 = vld [vmem:[%s4177_s5 + $0x4] ss:$0 sm:$0xff] }
  0x7e   : > { %v765_v44 = vadd.f32 %v717_v30, %v607_v19  ;;  %v767_v45 = vadd.f32 %v719_v31, %v609_v20  ;;  %v768_v46 = vadd.f32 %v720_v32, %v610_v24  ;;  %v770_v47 = vadd.f32 %v722_v33, %v612_v25  ;;  %v2927_v24 = vld [vmem:[%s4177_s5 + $0x5] ss:$0 sm:$0xff]  ;;  %v2932_v25 = vld [vmem:[%s4177_s5 + $0x6] ss:$0 sm:$0xff]  ;;  %v2944_v30 = vld [vmem:[%s4177_s5 + $0x8] ss:$0 sm:$0xff] }
  0x7f   : > { %v771_v51 = vadd.f32 %v723_v37, %v613_v26  ;;  %831 = vst.msk [vmem:[#allocation2] sm:$0xff] %vm830_vm0, %v764_v38  ;;  %v633_v52 = vmul.f32 %v2839_v13, %v583_v28  ;;  %v634_v53 = vmul.f32 %v2839_v13, %v584_v29  ;;  %v636_v54 = vmul.f32 %v2839_v13, %v586_v34  ;;  %v2949_v31 = vld [vmem:[%s4177_s5 + $0x9] ss:$0 sm:$0xff]  ;;  %v2962_v38 = vld [vmem:[%s4177_s5 + $0xa] ss:$0 sm:$0xff]  ;;  %s2179_s22 = sshll.u32 %s4021_s6, 4  ;;  %s4118_s22 = int_to_ptr.vmem [resolvable:$true] %s2179_s22 }
  0x80   : > { %832 = vst.msk [vmem:[#allocation2 + $0x8] sm:$0xff] %vm830_vm0, %v765_v44  ;;  %835 = vst.msk [vmem:[#allocation2 + $0x18] sm:$0xff] %vm830_vm0, %v767_v45  ;;  %v637_v56 = vmul.f32 %v2839_v13, %v587_v35  ;;  %v740_v57 = vmul.f32 %v2844_v17, %v690_v36  ;;  %v741_v58 = vmul.f32 %v2844_v17, %v691_v41  ;;  %v565_v36 = vld [vmem:[%s2823_s16 + $0x48] sm:$0xff]  ;;  %p2606_p0 = scmp.lt.s32.totalorder %s4118_s22, %s2604_s25 }
  0x81   : > { %836 = vst.msk [vmem:[#allocation2 + $0x20] sm:$0xff] %vm830_vm0, %v768_v46  ;;  %838 = vst.msk [vmem:[#allocation2 + $0x30] sm:$0xff] %vm830_vm0, %v770_v47  ;;  %v743_v59 = vmul.f32 %v2844_v17, %v693_v42  ;;  %v744_v63 = vmul.f32 %v2844_v17, %v694_v43  ;;  %v746_v0 = vmul.f32 %v2844_v17, %v696_v48  ;;  %v566_v43 = vld [vmem:[%s2823_s16 + $0x50] sm:$0xff]  ;;  %v675_v44 = vld [vmem:[%s2829_s26 + $0x48] sm:$0xff] }
  0x82   : > { %839 = vst.msk [vmem:[#allocation2 + $0x38] sm:$0xff] %vm830_vm0, %v771_v51  ;;  %v747_v1 = vmul.f32 %v2844_v17, %v697_v49  ;;  %v608_v2 = vmul.f32 %v2839_v13, %v558_v50  ;;  %v788_v6 = vadd.f32 %v740_v57, %v630_v39  ;;  %v789_v7 = vadd.f32 %v741_v58, %v631_v40 }
  0x83   : > { %v791_v8 = vadd.f32 %v743_v59, %v633_v52  ;;  %v611_v9 = vmul.f32 %v2839_v13, %v561_v55  ;;  %v792_v16 = vadd.f32 %v744_v63, %v634_v53  ;;  %v794_v18 = vadd.f32 %v746_v0, %v636_v54 }
  0x84   : > { %v795_v19 = vadd.f32 %v747_v1, %v637_v56  ;;  %v614_v20 = vmul.f32 %v2839_v13, %v564_v60  ;;  %856 = vst.msk [vmem:[#allocation2 + $0xc0] sm:$0xff] %vm830_vm0, %v788_v6  ;;  %857 = vst.msk [vmem:[#allocation2 + $0xc8] sm:$0xff] %vm830_vm0, %v789_v7  ;;  %v718_v26 = vmul.f32 %v2844_v17, %v668_v61  ;;  %v676_v6 = vld [vmem:[%s2829_s26 + $0x50] sm:$0xff] }
  0x85   : > { %859 = vst.msk [vmem:[#allocation2 + $0xd8] sm:$0xff] %vm830_vm0, %v791_v8  ;;  %v721_v27 = vmul.f32 %v2844_v17, %v671_v62  ;;  %v724_v28 = vmul.f32 %v2844_v17, %v674_v3  ;;  %v632_v29 = vmul.f32 %v2839_v13, %v582_v4  ;;  %860 = vst.msk [vmem:[#allocation2 + $0xe0] sm:$0xff] %vm830_vm0, %v792_v16 }
  0x86   : > { %862 = vst.msk [vmem:[#allocation2 + $0xf0] sm:$0xff] %vm830_vm0, %v794_v18  ;;  %863 = vst.msk [vmem:[#allocation2 + $0xf8] sm:$0xff] %vm830_vm0, %v795_v19  ;;  %v635_v32 = vmul.f32 %v2839_v13, %v585_v5  ;;  %v638_v33 = vmul.f32 %v2839_v13, %v588_v10  ;;  %v742_v34 = vmul.f32 %v2844_v17, %v692_v11  ;;  %v887_v37 = vld [vmem:[#allocation2] sm:$0xff] }
  0x87   : > { %v745_v35 = vmul.f32 %v2844_v17, %v695_v12  ;;  %v766_v39 = vadd.f32 %v718_v26, %v608_v2  ;;  %v769_v40 = vadd.f32 %v721_v27, %v611_v9  ;;  %v772_v41 = vadd.f32 %v724_v28, %v614_v20  ;;  %v956_v46 = vld [vmem:[#allocation2 + $0x1] sm:$0xff]  ;;  %v2968_v48 = vld [vmem:[#allocation2 + $0x18] sm:$0xff] }
  0x88   : > { %v748_v42 = vmul.f32 %v2844_v17, %v698_v21  ;;  %v924_v45 = vmul.f32 %v2905_v14, %v887_v37  ;;  %v1057_v47 = vld [vmem:[#allocation2 + $0x2] sm:$0xff]  ;;  %v790_v49 = vadd.f32 %v742_v34, %v632_v29  ;;  %v993_v51 = vmul.f32 %v2910_v15, %v956_v46  ;;  %v2971_v52 = vld [vmem:[#allocation2 + $0x19] sm:$0xff]  ;;  %v2975_v54 = vld [vmem:[#allocation2 + $0x30] sm:$0xff] }
  0x89   : > { %v793_v50 = vadd.f32 %v745_v35, %v635_v32  ;;  %v2973_v53 = vld [vmem:[#allocation2 + $0x1a] sm:$0xff]  ;;  %834 = vst.msk [vmem:[#allocation2 + $0x10] sm:$0x3] %vm833_vm1, %v766_v39  ;;  %837 = vst.msk [vmem:[#allocation2 + $0x28] sm:$0x3] %vm833_vm1, %v769_v40  ;;  %v615_v56 = vmul.f32 %v2839_v13, %v565_v36  ;;  %v1094_v57 = vmul.f32 %v2917_v22, %v1057_v47  ;;  %v2990_v61 = vld [vmem:[#allocation2 + $0x31] sm:$0xff] }
  0x8a   : > { %840 = vst.msk [vmem:[#allocation2 + $0x40] sm:$0x3] %vm833_vm1, %v772_v41  ;;  %v796_v55 = vadd.f32 %v748_v42, %v638_v33  ;;  %v1197_v58 = vmul.f32 %v2922_v23, %v2968_v48  ;;  %v1298_v59 = vmul.f32 %v2927_v24, %v2971_v52  ;;  %v2988_v60 = vmul.f32 %v2932_v25, %v2973_v53  ;;  %v2992_v62 = vld [vmem:[#allocation2 + $0x32] sm:$0xff]  ;;  %v888_v63 = vld [vmem:[#allocation2 + $0x8] sm:$0xff]  ;;  %v3004_v3 = vld [vmem:[#allocation2 + $0x20] sm:$0xff] }
  0x8b   : > { %858 = vst.msk [vmem:[#allocation2 + $0xd0] sm:$0x3] %vm833_vm1, %v790_v49  ;;  %861 = vst.msk [vmem:[#allocation2 + $0xe8] sm:$0x3] %vm833_vm1, %v793_v50  ;;  %v1025_v0 = vadd.f32 %v993_v51, %v924_v45  ;;  %v2998_v1 = vmul.f32 %v2944_v30, %v2975_v54  ;;  %v3002_v2 = vmul.f32 %v2949_v31, %v2990_v61  ;;  %v3006_v4 = vld [vmem:[#allocation2 + $0x38] sm:$0xff]  ;;  %v903_v8 = vld [vmem:[#allocation2 + $0xc0] sm:$0xff] }
  0x8c   : > { %4197 = vst [vmem:[#allocation9_spill] sm:$0xff] %v3006_v4  ;;  %864 = vst.msk [vmem:[#allocation2 + $0x100] sm:$0x3] %vm833_vm1, %v796_v55  ;;  %v3010_v5 = vmul.f32 %v2839_v13, %v566_v43  ;;  %v3015_v7 = vmul.f32 %v2962_v38, %v2992_v62  ;;  %v972_v9 = vld [vmem:[#allocation2 + $0xc1] sm:$0xff]  ;;  %v925_v11 = vmul.f32 %v2905_v14, %v888_v63  ;;  %v3025_v21 = vld [vmem:[#allocation2 + $0xd8] sm:$0xff] }
  0x8d   : > { %v1073_v10 = vld [vmem:[#allocation2 + $0xc2] sm:$0xff]  ;;  %v3020_v12 = vmul.f32 %v2922_v23, %v3004_v3  ;;  %v725_v16 = vmul.f32 %v2844_v17, %v675_v44  ;;  %v1126_v18 = vadd.f32 %v1094_v57, %v1025_v0  ;;  %v940_v19 = vmul.f32 %v2905_v14, %v903_v8  ;;  %v3027_v26 = vld [vmem:[#allocation2 + $0xd9] sm:$0xff]  ;;  %v3038_v33 = vld [vmem:[#allocation2 + $0xf0] sm:$0xff] }
  0x8e   : > { %v1009_v20 = vmul.f32 %v2910_v15, %v972_v9  ;;  %v3029_v27 = vld [vmem:[#allocation2 + $0xda] sm:$0xff]  ;;  %v3033_v28 = vmul.f32 %v2944_v30, %v3006_v4  ;;  %v1110_v29 = vmul.f32 %v2917_v22, %v1073_v10  ;;  %v1213_v32 = vmul.f32 %v2922_v23, %v3025_v21  ;;  %v3040_v34 = vld [vmem:[#allocation2 + $0xf1] sm:$0xff]  ;;  %v904_v43 = vld [vmem:[#allocation2 + $0xc8] sm:$0xff] }
  0x8f   : > { %v3042_v35 = vld [vmem:[#allocation2 + $0xf2] sm:$0xff]  ;;  %v726_v36 = vmul.f32 %v2844_v17, %v676_v6  ;;  %v773_v37 = vadd.f32 %v725_v16, %v615_v56  ;;  %v1229_v39 = vadd.f32 %v1197_v58, %v1126_v18  ;;  %v1314_v41 = vmul.f32 %v2927_v24, %v3027_v26  ;;  %v3049_v44 = vld [vmem:[#allocation2 + $0xe0] sm:$0xff] }
  0x90   : > { %v1041_v40 = vadd.f32 %v1009_v20, %v940_v19  ;;  %v1415_v42 = vmul.f32 %v2932_v25, %v3029_v27  ;;  %4198 = vst [vmem:[#allocation10_spill] sm:$0xff] %v3049_v44  ;;  %v3051_v45 = vld [vmem:[#allocation2 + $0xf8] sm:$0xff]  ;;  %v1518_v46 = vmul.f32 %v2944_v30, %v3038_v33  ;;  %v1619_v47 = vmul.f32 %v2949_v31, %v3040_v34  ;;  %v957_v50 = vld [vmem:[#allocation2 + $0x9] sm:$0xff]  ;;  %v3061_v55 = vld [vmem:[#allocation2 + $0x21] sm:$0xff] }
  0x91   : > { %4199 = vst [vmem:[#allocation11_spill] sm:$0xff] %v3051_v45  ;;  %v3059_v49 = vmul.f32 %v2962_v38, %v3042_v35  ;;  %v1058_v51 = vld [vmem:[#allocation2 + $0xa] sm:$0xff]  ;;  %v941_v56 = vmul.f32 %v2905_v14, %v904_v43  ;;  %841 = vst.msk [vmem:[#allocation2 + $0x48] sm:$0xff] %vm830_vm0, %v773_v37  ;;  %v1330_v57 = vadd.f32 %v1298_v59, %v1229_v39  ;;  %v3066_v0 = vld [vmem:[#allocation2 + $0x22] sm:$0xff] }
  0x92   : > { %v1142_v58 = vadd.f32 %v1110_v29, %v1041_v40  ;;  %v994_v63 = vmul.f32 %v2910_v15, %v957_v50  ;;  %v3068_v6 = vld [vmem:[#allocation2 + $0x39] sm:$0xff]  ;;  %v1214_v9 = vmul.f32 %v2922_v23, %v3049_v44  ;;  %v1095_v10 = vmul.f32 %v2917_v22, %v1058_v51  ;;  %v973_v18 = vld [vmem:[#allocation2 + $0xc9] sm:$0xff]  ;;  %v3079_v20 = vld [vmem:[#allocation2 + $0xe1] sm:$0xff] }
  0x93   : > { %v3070_v8 = vld [vmem:[#allocation2 + $0x3a] sm:$0xff]  ;;  %v1299_v16 = vmul.f32 %v2927_v24, %v3061_v55  ;;  %v1400_v59 = vmul.f32 %v2932_v25, %v3066_v0  ;;  %v1074_v19 = vld [vmem:[#allocation2 + $0xca] sm:$0xff]  ;;  %4201 = vst [vmem:[#allocation13_spill] sm:$0xff] %v3079_v20  ;;  %v1519_v29 = vmul.f32 %v2944_v30, %v3051_v45  ;;  %v1431_v37 = vadd.f32 %v2988_v60, %v1330_v57  ;;  %v3085_v50 = vld [vmem:[#allocation2 + $0xe2] sm:$0xff] }
  0x94   : > { %4200 = vst [vmem:[#allocation12_spill] sm:$0xff] %v3070_v8  ;;  %v1245_v39 = vadd.f32 %v1213_v32, %v1142_v58  ;;  %v1026_v40 = vadd.f32 %v994_v63, %v925_v11  ;;  %v1010_v43 = vmul.f32 %v2910_v15, %v973_v18  ;;  %v1604_v51 = vmul.f32 %v2949_v31, %v3068_v6  ;;  %v3097_v58 = vld [vmem:[#allocation2 + $0xf9] sm:$0xff] }
  0x95   : > { %v3091_v44 = vmul.f32 %v2962_v38, %v3070_v8  ;;  %v1111_v4 = vmul.f32 %v2917_v22, %v1074_v19  ;;  %v1315_v45 = vmul.f32 %v2927_v24, %v3079_v20  ;;  %v1534_v60 = vadd.f32 %v2998_v1, %v1431_v37  ;;  %v3099_v63 = vld [vmem:[#allocation2 + $0xfa] sm:$0xff]  ;;  %v589_v37 = vld [vmem:[%s2823_s16 + $0x108] sm:$0xff] }
  0x96   : > { %v1346_v11 = vadd.f32 %v1314_v41, %v1245_v39  ;;  %v1127_v32 = vadd.f32 %v1095_v10, %v1026_v40  ;;  %v1042_v57 = vadd.f32 %v1010_v43, %v941_v56  ;;  %v1416_v18 = vmul.f32 %v2932_v25, %v3085_v50  ;;  %v700_v43 = vld [vmem:[%s2829_s26 + $0x110] sm:$0xff] }
  0x97   : > { %v774_v8 = vadd.f32 %v726_v36, %v3010_v5  ;;  %v926_v19 = vmul.f32 %v2905_v14, %v2968_v48  ;;  %v995_v20 = vmul.f32 %v2910_v15, %v2971_v52  ;;  %v1635_v1 = vadd.f32 %v3002_v2, %v1534_v60  ;;  %v590_v36 = vld [vmem:[%s2823_s16 + $0x110] sm:$0xff] }
  0x98   : > { %v1447_v41 = vadd.f32 %v1415_v42, %v1346_v11  ;;  %v1230_v56 = vadd.f32 %v3020_v12, %v1127_v32  ;;  %v1143_v10 = vadd.f32 %v1111_v4, %v1042_v57  ;;  %v1620_v39 = vmul.f32 %v2949_v31, %v3097_v58  ;;  %v699_v4 = vld [vmem:[%s2829_s26 + $0x108] sm:$0xff] }
  0x99   : > { %v1721_v5 = vmul.f32 %v2962_v38, %v3099_v63  ;;  %842 = vst.msk [vmem:[#allocation2 + $0x50] sm:$0xff] %vm830_vm0, %v774_v8  ;;  %v1027_v48 = vadd.f32 %v995_v20, %v926_v19  ;;  %v1096_v52 = vmul.f32 %v2917_v22, %v2973_v53  ;;  %v1736_v2 = vadd.f32 %v3015_v7, %v1635_v1 }
  0x9a   : > { %v1550_v42 = vadd.f32 %v1518_v46, %v1447_v41  ;;  %v1331_v40 = vadd.f32 %v1299_v16, %v1230_v56  ;;  %v1246_v12 = vadd.f32 %v1214_v9, %v1143_v10  ;;  %v1199_v11 = vmul.f32 %v2922_v23, %v2975_v54 }
  0x9b   : > { %v1128_v60 = vadd.f32 %v1096_v52, %v1027_v48  ;;  %v1300_v32 = vmul.f32 %v2927_v24, %v2990_v61  ;;  %v639_v8 = vmul.f32 %v2839_v13, %v589_v37  ;;  %2445 = vmatprep.mubr.msk.f32.mxu0 %vm830_vm0, %v1736_v2  ;;  %v640_v46 = vmul.f32 %v2839_v13, %v590_v36  ;;  %v567_v52 = vld [vmem:[%s2823_s16 + $0x58] sm:$0x3] }
  0x9c   : > { %v1651_v53 = vadd.f32 %v1619_v47, %v1550_v42  ;;  %v1432_v20 = vadd.f32 %v1400_v59, %v1331_v40  ;;  %v1347_v7 = vadd.f32 %v1315_v45, %v1246_v12  ;;  %v749_v16 = vmul.f32 %v2844_v17, %v699_v4  ;;  %v3135_v47 = vld [vmem:[#allocation2 + $0x48] sm:$0xff] }
  0x9d   : > { %v1231_v9 = vadd.f32 %v1199_v11, %v1128_v60  ;;  %v750_v57 = vmul.f32 %v2844_v17, %v700_v43  ;;  %v942_v19 = vmul.f32 %v2905_v14, %v3025_v21  ;;  %v1011_v45 = vmul.f32 %v2910_v15, %v3027_v26  ;;  %v677_v26 = vld [vmem:[%s2829_s26 + $0x58] sm:$0x3] }
  0x9e   : > { %v1752_v1 = vadd.f32 %v3059_v49, %v1651_v53  ;;  %v1535_v41 = vadd.f32 %v3033_v28, %v1432_v20  ;;  %v1448_v56 = vadd.f32 %v1416_v18, %v1347_v7  ;;  %v1401_v10 = vmul.f32 %v2932_v25, %v2992_v62  ;;  %v591_v7 = vld [vmem:[%s2823_s16 + $0x118] sm:$0x3] }
  0x9f   : > { %v1332_v59 = vadd.f32 %v1300_v32, %v1231_v9  ;;  %v797_v37 = vadd.f32 %v749_v16, %v639_v8  ;;  %v798_v48 = vadd.f32 %v750_v57, %v640_v46  ;;  %v1043_v18 = vadd.f32 %v1011_v45, %v942_v19  ;;  %v701_v46 = vld [vmem:[%s2829_s26 + $0x118] sm:$0x3] }
  0xa0   : > { %2469 = vmatprep.mubr.msk.f32.mxu1 %vm830_vm0, %v1752_v1  ;;  %v1636_v21 = vadd.f32 %v1604_v51, %v1535_v41  ;;  %v1551_v49 = vadd.f32 %v1519_v29, %v1448_v56  ;;  %v3143_v36 = vld [vmem:[#allocation2 + $0x49] sm:$0xff]  ;;  %v1112_v2 = vmul.f32 %v2917_v22, %v3029_v27  ;;  %v1504_v40 = vmul.f32 %v2944_v30, %v3135_v47 }
  0xa1   : > { %v3145_v28 = vld [vmem:[#allocation2 + $0x4a] sm:$0xff]  ;;  %v1433_v42 = vadd.f32 %v1401_v10, %v1332_v59  ;;  %v1605_v12 = vmul.f32 %v2949_v31, %v3143_v36  ;;  %865 = vst.msk [vmem:[#allocation2 + $0x108] sm:$0xff] %vm830_vm0, %v797_v37  ;;  %866 = vst.msk [vmem:[#allocation2 + $0x110] sm:$0xff] %vm830_vm0, %v798_v48  ;;  %v1215_v29 = vmul.f32 %v2922_v23, %v3038_v33  ;;  %v4203_v10 = vld [vmem:[#allocation10_spill] sm:$0xff] }
  0xa2   : > { %v1737_v51 = vadd.f32 %v3091_v44, %v1636_v21  ;;  %v1652_v27 = vadd.f32 %v1620_v39, %v1551_v49  ;;  %v1706_v4 = vmul.f32 %v2962_v38, %v3145_v28  ;;  %v1144_v43 = vadd.f32 %v1112_v2, %v1043_v18  ;;  %v4202_v1 = vld [vmem:[#allocation9_spill] sm:$0xff]  ;;  %v568_v48 = vld [vmem:[%s2823_s16 + $0x60] sm:$0xff] }
  0xa3   : > { %v1536_v60 = vadd.f32 %v1504_v40, %v1433_v42  ;;  %v617_v11 = vmul.f32 %v2839_v13, %v567_v52  ;;  %v727_v32 = vmul.f32 %v2844_v17, %v677_v26  ;;  %v927_v8 = vmul.f32 %v2905_v14, %v3004_v3  ;;  %v3181_v56 = vld [vmem:[#allocation2 + $0x50] sm:$0xff]  ;;  %v4204_v26 = vld [vmem:[#allocation12_spill] sm:$0xff] }
  0xa4   : > { %2446 = vmatmul.mubr.msk.f32.vlgmr.msra.gmra.mrb[0].mxu0 %vm830_vm0, %v1737_v51  ;;  %v1753_v53 = vadd.f32 %v1721_v5, %v1652_v27  ;;  %v1247_v20 = vadd.f32 %v1215_v29, %v1144_v43  ;;  %v1316_v44 = vmul.f32 %v2927_v24, %v3040_v34  ;;  %v996_v39 = vmul.f32 %v2910_v15, %v3061_v55  ;;  %v4205_v40 = vld [vmem:[#allocation13_spill] sm:$0xff]  ;;  %v569_v43 = vld [vmem:[%s2823_s16 + $0x68] sm:$0xff] }
  0xa5   : > { %v1637_v9 = vadd.f32 %v1605_v12, %v1536_v60  ;;  %v1417_v16 = vmul.f32 %v2932_v25, %v3042_v35  ;;  %v775_v57 = vadd.f32 %v727_v32, %v617_v11  ;;  %v1097_v3 = vmul.f32 %v2917_v22, %v3066_v0  ;;  %v678_v60 = vld [vmem:[%s2829_s26 + $0x60] sm:$0xff] }
  0xa6   : > { %2470 = vmatmul.mubr.msk.f32.vlgmr.msra.gmra.mrb[0].mxu1 %vm830_vm0, %v1753_v53  ;;  %v1348_v5 = vadd.f32 %v1316_v44, %v1247_v20  ;;  %v1028_v19 = vadd.f32 %v996_v39, %v927_v8  ;;  %v1200_v41 = vmul.f32 %v2922_v23, %v4202_v1  ;;  %v1301_v55 = vmul.f32 %v2927_v24, %v3068_v6  ;;  %v679_v20 = vld [vmem:[%s2829_s26 + $0x68] sm:$0xff]  ;;  %v4206_v39 = vld [vmem:[#allocation11_spill] sm:$0xff] }
  0xa7   : > { %v1738_v45 = vadd.f32 %v1706_v4, %v1637_v9  ;;  %843 = vst.msk [vmem:[#allocation2 + $0x58] sm:$0x3] %vm833_vm1, %v775_v57  ;;  %v641_v59 = vmul.f32 %v2839_v13, %v591_v7  ;;  %v751_v0 = vmul.f32 %v2844_v17, %v701_v46  ;;  %v943_v37 = vmul.f32 %v2905_v14, %v4203_v10 }
  0xa8   : > { %v1449_v52 = vadd.f32 %v1417_v16, %v1348_v5  ;;  %v3189_v21 = vld [vmem:[#allocation2 + $0x108] sm:$0xff]  ;;  %v1129_v2 = vadd.f32 %v1097_v3, %v1028_v19  ;;  %v1402_v42 = vmul.f32 %v2932_v25, %v4204_v26  ;;  %v1012_v12 = vmul.f32 %v2910_v15, %v4205_v40  ;;  %v3219_v57 = vld [vmem:[#allocation2 + $0x110] sm:$0xff] }
  0xa9   : > { %v3191_v49 = vld [vmem:[#allocation2 + $0x109] sm:$0xff]  ;;  %2448 = vmatprep.mubr.msk.f32.mxu0 %vm830_vm0, %v1738_v45  ;;  %v1520_v29 = vmul.f32 %v2944_v30, %v3189_v21  ;;  %v1505_v51 = vmul.f32 %v2944_v30, %v3181_v56  ;;  %v799_v27 = vadd.f32 %v751_v0, %v641_v59  ;;  %v1113_v4 = vmul.f32 %v2917_v22, %v3085_v50  ;;  %v592_v0 = vld [vmem:[%s2823_s16 + $0x120] sm:$0xff] }
  0xaa   : > { %v3193_v18 = vld [vmem:[#allocation2 + $0x10a] sm:$0xff]  ;;  %v1621_v11 = vmul.f32 %v2949_v31, %v3191_v49  ;;  %v1232_v8 = vadd.f32 %v1200_v41, %v1129_v2  ;;  %v1044_v53 = vadd.f32 %v1012_v12, %v943_v37  ;;  %v1216_v7 = vmul.f32 %v2922_v23, %v4206_v39 }
  0xab   : > { %v1722_v32 = vmul.f32 %v2962_v38, %v3193_v18  ;;  %v1552_v44 = vadd.f32 %v1520_v29, %v1449_v52  ;;  %867 = vst.msk [vmem:[#allocation2 + $0x118] sm:$0x3] %vm833_vm1, %v799_v27  ;;  %v1317_v50 = vmul.f32 %v2927_v24, %v3097_v58  ;;  %v618_v46 = vmul.f32 %v2839_v13, %v568_v48  ;;  %v593_v40 = vld [vmem:[%s2823_s16 + $0x128] sm:$0xff] }
  0xac   : > { %v1333_v9 = vadd.f32 %v1301_v55, %v1232_v8  ;;  %v1145_v16 = vadd.f32 %v1113_v4, %v1044_v53  ;;  %v619_v3 = vmul.f32 %v2839_v13, %v569_v43  ;;  %v728_v5 = vmul.f32 %v2844_v17, %v678_v60 }
  0xad   : > { %v1653_v19 = vadd.f32 %v1621_v11, %v1552_v44  ;;  %v729_v41 = vmul.f32 %v2844_v17, %v679_v20  ;;  %v928_v45 = vmul.f32 %v2905_v14, %v2975_v54  ;;  %v997_v59 = vmul.f32 %v2910_v15, %v2990_v61  ;;  %v703_v11 = vld [vmem:[%s2829_s26 + $0x128] sm:$0xff] }
  0xae   : > { %v1434_v55 = vadd.f32 %v1402_v42, %v1333_v9  ;;  %v3229_v10 = vld [vmem:[#allocation2 + $0x51] sm:$0xff]  ;;  %v1248_v48 = vadd.f32 %v1216_v7, %v1145_v16  ;;  %v1418_v52 = vmul.f32 %v2932_v25, %v3099_v63  ;;  %v776_v2 = vadd.f32 %v728_v5, %v618_v46  ;;  %v702_v42 = vld [vmem:[%s2829_s26 + $0x120] sm:$0xff] }
  0xaf   : > { %v3231_v37 = vld [vmem:[#allocation2 + $0x52] sm:$0xff]  ;;  %v1754_v12 = vadd.f32 %v1722_v32, %v1653_v19  ;;  %v1521_v54 = vmul.f32 %v2944_v30, %v3219_v57  ;;  %v777_v29 = vadd.f32 %v729_v41, %v619_v3  ;;  %v1098_v61 = vmul.f32 %v2917_v22, %v2992_v62 }
  0xb0   : > { %v1537_v27 = vadd.f32 %v1505_v51, %v1434_v55  ;;  %v1606_v4 = vmul.f32 %v2949_v31, %v3229_v10  ;;  %v1349_v43 = vadd.f32 %v1317_v50, %v1248_v48  ;;  %844 = vst.msk [vmem:[#allocation2 + $0x60] sm:$0xff] %vm830_vm0, %v776_v2  ;;  %v1029_v60 = vadd.f32 %v997_v59, %v928_v45  ;;  %v680_v55 = vld [vmem:[%s2829_s26 + $0x70] sm:$0x3] }
  0xb1   : > { %2472 = vmatprep.mubr.msk.f32.mxu1 %vm830_vm0, %v1754_v12  ;;  %v1707_v32 = vmul.f32 %v2962_v38, %v3231_v37  ;;  %845 = vst.msk [vmem:[#allocation2 + $0x68] sm:$0xff] %vm830_vm0, %v777_v29  ;;  %v1201_v62 = vmul.f32 %v2922_v23, %v3135_v47  ;;  %v642_v51 = vmul.f32 %v2839_v13, %v592_v0  ;;  %v570_v0 = vld [vmem:[%s2823_s16 + $0x70] sm:$0x3] }
  0xb2   : > { %v643_v8 = vmul.f32 %v2839_v13, %v593_v40  ;;  %v1638_v53 = vadd.f32 %v1606_v4, %v1537_v27  ;;  %v1450_v20 = vadd.f32 %v1418_v52, %v1349_v43  ;;  %v3253_v44 = vld [vmem:[#allocation2 + $0x111] sm:$0xff]  ;;  %v1130_v50 = vadd.f32 %v1098_v61, %v1029_v60 }
  0xb3   : > { %v3255_v7 = vld [vmem:[#allocation2 + $0x112] sm:$0xff]  ;;  %v752_v46 = vmul.f32 %v2844_v17, %v702_v42  ;;  %v1622_v9 = vmul.f32 %v2949_v31, %v3253_v44  ;;  %v1302_v16 = vmul.f32 %v2927_v24, %v3143_v36  ;;  %v753_v3 = vmul.f32 %v2844_v17, %v703_v11 }
  0xb4   : > { %v944_v5 = vmul.f32 %v2905_v14, %v3038_v33  ;;  %v1739_v19 = vadd.f32 %v1707_v32, %v1638_v53  ;;  %v1553_v41 = vadd.f32 %v1521_v54, %v1450_v20  ;;  %v1233_v45 = vadd.f32 %v1201_v62, %v1130_v50  ;;  %v594_v20 = vld [vmem:[%s2823_s16 + $0x130] sm:$0x3] }
  0xb5   : > { %v800_v59 = vadd.f32 %v752_v46, %v642_v51  ;;  %v1723_v48 = vmul.f32 %v2962_v38, %v3255_v7  ;;  %v1403_v52 = vmul.f32 %v2932_v25, %v3145_v28  ;;  %v801_v2 = vadd.f32 %v753_v3, %v643_v8  ;;  %v704_v50 = vld [vmem:[%s2829_s26 + $0x130] sm:$0x3] }
  0xb6   : > { %v1013_v40 = vmul.f32 %v2910_v15, %v3040_v34  ;;  %2449 = vmatmul.mubr.msk.f32.gmra.mrb[2].mxu0 %vm830_vm0, %v1739_v19  ;;  %v1654_v12 = vadd.f32 %v1622_v9, %v1553_v41  ;;  %v1334_v33 = vadd.f32 %v1302_v16, %v1233_v45  ;;  %v1114_v54 = vmul.f32 %v2917_v22, %v3042_v35 }
  0xb7   : > { %868 = vst.msk [vmem:[#allocation2 + $0x120] sm:$0xff] %vm830_vm0, %v800_v59  ;;  %v1217_v29 = vmul.f32 %v2922_v23, %v3189_v21  ;;  %v3279_v61 = vld [vmem:[#allocation2 + $0x60] sm:$0xff]  ;;  %869 = vst.msk [vmem:[#allocation2 + $0x128] sm:$0xff] %vm830_vm0, %v801_v2  ;;  %v620_v34 = vmul.f32 %v2839_v13, %v570_v0  ;;  %v730_v27 = vmul.f32 %v2844_v17, %v680_v55 }
  0xb8   : > { %v1045_v42 = vadd.f32 %v1013_v40, %v944_v5  ;;  %v929_v4 = vmul.f32 %v2905_v14, %v4202_v1  ;;  %v1755_v43 = vadd.f32 %v1723_v48, %v1654_v12  ;;  %v1435_v60 = vadd.f32 %v1403_v52, %v1334_v33  ;;  %v3288_v11 = vld [vmem:[#allocation2 + $0x61] sm:$0xff] }
  0xb9   : > { %v1506_v35 = vmul.f32 %v2944_v30, %v3279_v61  ;;  %v3290_v32 = vld [vmem:[#allocation2 + $0x62] sm:$0xff]  ;;  %v998_v62 = vmul.f32 %v2910_v15, %v3068_v6  ;;  %v1318_v8 = vmul.f32 %v2927_v24, %v3191_v49  ;;  %v1419_v53 = vmul.f32 %v2932_v25, %v3193_v18 }
  0xba   : > { %v1146_v51 = vadd.f32 %v1114_v54, %v1045_v42  ;;  %v778_v1 = vadd.f32 %v730_v27, %v620_v34  ;;  %2473 = vmatmul.mubr.msk.f32.gmra.mrb[2].mxu1 %vm830_vm0, %v1755_v43  ;;  %v1607_v9 = vmul.f32 %v2949_v31, %v3288_v11  ;;  %v1099_v6 = vmul.f32 %v2917_v22, %v4204_v26  ;;  %v3312_v45 = vld [vmem:[#allocation2 + $0x68] sm:$0xff] }
  0xbb   : > { %v1538_v46 = vadd.f32 %v1506_v35, %v1435_v60  ;;  %v1030_v16 = vadd.f32 %v998_v62, %v929_v4  ;;  %v1708_v3 = vmul.f32 %v2962_v38, %v3290_v32  ;;  %v1202_v19 = vmul.f32 %v2922_v23, %v3181_v56  ;;  %v571_v4 = vld [vmem:[%s2823_s16 + $0x78] sm:$0xff] }
  0xbc   : > { %v1249_v5 = vadd.f32 %v1217_v29, %v1146_v51  ;;  %846 = vst.msk [vmem:[#allocation2 + $0x70] sm:$0x3] %vm833_vm1, %v778_v1  ;;  %v1303_v41 = vmul.f32 %v2927_v24, %v3229_v10  ;;  %v644_v55 = vmul.f32 %v2839_v13, %v594_v20  ;;  %v754_v26 = vmul.f32 %v2844_v17, %v704_v50  ;;  %v681_v62 = vld [vmem:[%s2829_s26 + $0x78] sm:$0xff]  ;;  %v682_v51 = vld [vmem:[%s2829_s26 + $0x80] sm:$0xff] }
  0xbd   : > { %v1639_v59 = vadd.f32 %v1607_v9, %v1538_v46  ;;  %v1131_v0 = vadd.f32 %v1099_v6, %v1030_v16  ;;  %v1404_v2 = vmul.f32 %v2932_v25, %v3231_v37  ;;  %v945_v40 = vmul.f32 %v2905_v14, %v4206_v39 }
  0xbe   : > { %v1350_v48 = vadd.f32 %v1318_v8, %v1249_v5  ;;  %v3316_v52 = vld [vmem:[#allocation2 + $0x120] sm:$0xff]  ;;  %v1014_v12 = vmul.f32 %v2910_v15, %v3097_v58  ;;  %v1507_v34 = vmul.f32 %v2944_v30, %v3312_v45  ;;  %v802_v27 = vadd.f32 %v754_v26, %v644_v55 }
  0xbf   : > { %v1740_v33 = vadd.f32 %v1708_v3, %v1639_v59  ;;  %v3324_v54 = vld [vmem:[#allocation2 + $0x121] sm:$0xff]  ;;  %v1234_v42 = vadd.f32 %v1202_v19, %v1131_v0  ;;  %v1522_v60 = vmul.f32 %v2944_v30, %v3316_v52  ;;  %v1115_v39 = vmul.f32 %v2917_v22, %v3099_v63 }
  0xc0   : > { %v3326_v29 = vld [vmem:[#allocation2 + $0x122] sm:$0xff]  ;;  %v1451_v43 = vadd.f32 %v1419_v53, %v1350_v48  ;;  %v1046_v35 = vadd.f32 %v1014_v12, %v945_v40  ;;  %v1623_v8 = vmul.f32 %v2949_v31, %v3324_v54  ;;  %870 = vst.msk [vmem:[#allocation2 + $0x130] sm:$0x3] %vm833_vm1, %v802_v27  ;;  %v1218_v53 = vmul.f32 %v2922_v23, %v3219_v57 }
  0xc1   : > { %v572_v58 = vld [vmem:[%s2823_s16 + $0x80] sm:$0xff]  ;;  %2451 = vmatprep.mubr.msk.f32.mxu0 %vm830_vm0, %v1740_v33  ;;  %v1724_v1 = vmul.f32 %v2962_v38, %v3326_v29  ;;  %v1335_v20 = vadd.f32 %v1303_v41, %v1234_v42  ;;  %v1319_v63 = vmul.f32 %v2927_v24, %v3253_v44  ;;  %v621_v9 = vmul.f32 %v2839_v13, %v571_v4  ;;  %v3351_v3 = vld [vmem:[#allocation2 + $0x128] sm:$0xff]  ;;  %v595_v42 = vld [vmem:[%s2823_s16 + $0x138] sm:$0xff] }
  0xc2   : > { %v1554_v50 = vadd.f32 %v1522_v60, %v1451_v43  ;;  %v1147_v46 = vadd.f32 %v1115_v39, %v1046_v35  ;;  %v622_v5 = vmul.f32 %v2839_v13, %v572_v58  ;;  %v731_v19 = vmul.f32 %v2844_v17, %v681_v62  ;;  %v596_v27 = vld [vmem:[%s2823_s16 + $0x140] sm:$0xff]  ;;  %v705_v39 = vld [vmem:[%s2829_s26 + $0x138] sm:$0xff] }
  0xc3   : > { %v1436_v16 = vadd.f32 %v1404_v2, %v1335_v20  ;;  %v3349_v6 = vld [vmem:[#allocation2 + $0x69] sm:$0xff]  ;;  %v732_v41 = vmul.f32 %v2844_v17, %v682_v51  ;;  %v1420_v48 = vmul.f32 %v2932_v25, %v3255_v7  ;;  %v930_v33 = vmul.f32 %v2905_v14, %v3135_v47  ;;  %v706_v51 = vld [vmem:[%s2829_s26 + $0x140] sm:$0xff] }
  0xc4   : > { %v1655_v59 = vadd.f32 %v1623_v8, %v1554_v50  ;;  %v1608_v0 = vmul.f32 %v2949_v31, %v3349_v6  ;;  %v3358_v55 = vld [vmem:[#allocation2 + $0x6a] sm:$0xff]  ;;  %v1250_v26 = vadd.f32 %v1218_v53, %v1147_v46  ;;  %v779_v40 = vadd.f32 %v731_v19, %v621_v9 }
  0xc5   : > { %v1539_v2 = vadd.f32 %v1507_v34, %v1436_v16  ;;  %v780_v12 = vadd.f32 %v732_v41, %v622_v5  ;;  %v1523_v60 = vmul.f32 %v2944_v30, %v3351_v3  ;;  %v999_v35 = vmul.f32 %v2910_v15, %v3143_v36 }
  0xc6   : > { %v1756_v4 = vadd.f32 %v1724_v1, %v1655_v59  ;;  %v1351_v43 = vadd.f32 %v1319_v63, %v1250_v26  ;;  %v1709_v34 = vmul.f32 %v2962_v38, %v3358_v55  ;;  %847 = vst.msk [vmem:[#allocation2 + $0x78] sm:$0xff] %vm830_vm0, %v779_v40  ;;  %v1100_v47 = vmul.f32 %v2917_v22, %v3145_v28  ;;  %v573_v59 = vld [vmem:[%s2823_s16 + $0x88] sm:$0x3] }
  0xc7   : > { %v1640_v58 = vadd.f32 %v1608_v0, %v1539_v2  ;;  %848 = vst.msk [vmem:[#allocation2 + $0x80] sm:$0xff] %vm830_vm0, %v780_v12  ;;  %v1203_v62 = vmul.f32 %v2922_v23, %v3279_v61  ;;  %v3381_v8 = vld [vmem:[#allocation2 + $0x129] sm:$0xff]  ;;  %v1031_v20 = vadd.f32 %v999_v35, %v930_v33  ;;  %v645_v53 = vmul.f32 %v2839_v13, %v595_v42 }
  0xc8   : > { %2475 = vmatprep.mubr.msk.f32.mxu1 %vm830_vm0, %v1756_v4  ;;  %v1452_v36 = vadd.f32 %v1420_v48, %v1351_v43  ;;  %v3383_v1 = vld [vmem:[#allocation2 + $0x12a] sm:$0xff]  ;;  %v646_v50 = vmul.f32 %v2839_v13, %v596_v27  ;;  %v1624_v28 = vmul.f32 %v2949_v31, %v3381_v8  ;;  %v1304_v63 = vmul.f32 %v2927_v24, %v3288_v11  ;;  %v683_v0 = vld [vmem:[%s2829_s26 + $0x88] sm:$0x3] }
  0xc9   : > { %v1741_v46 = vadd.f32 %v1709_v34, %v1640_v58  ;;  %v755_v9 = vmul.f32 %v2844_v17, %v705_v39  ;;  %v1132_v5 = vadd.f32 %v1100_v47, %v1031_v20  ;;  %v756_v19 = vmul.f32 %v2844_v17, %v706_v51 }
  0xca   : > { %v1555_v16 = vadd.f32 %v1523_v60, %v1452_v36  ;;  %v946_v41 = vmul.f32 %v2905_v14, %v3189_v21  ;;  %v1725_v26 = vmul.f32 %v2962_v38, %v3383_v1  ;;  %v1405_v48 = vmul.f32 %v2932_v25, %v3290_v32 }
  0xcb   : > { %2452 = vmatmul.mubr.msk.f32.gmra.mrb[4].mxu0 %vm830_vm0, %v1741_v46  ;;  %v803_v2 = vadd.f32 %v755_v9, %v645_v53  ;;  %v1015_v40 = vmul.f32 %v2910_v15, %v3191_v49  ;;  %v1235_v33 = vadd.f32 %v1203_v62, %v1132_v5  ;;  %v804_v42 = vadd.f32 %v756_v19, %v646_v50  ;;  %v597_v53 = vld [vmem:[%s2823_s16 + $0x148] sm:$0x3] }
  0xcc   : > { %v1656_v12 = vadd.f32 %v1624_v28, %v1555_v16  ;;  %v1116_v21 = vmul.f32 %v2917_v22, %v3193_v18  ;;  %v1219_v4 = vmul.f32 %v2922_v23, %v3316_v52  ;;  %v623_v43 = vmul.f32 %v2839_v13, %v573_v59 }
  0xcd   : > { %871 = vst.msk [vmem:[#allocation2 + $0x138] sm:$0xff] %vm830_vm0, %v803_v2  ;;  %v1047_v27 = vadd.f32 %v1015_v40, %v946_v41  ;;  %v733_v60 = vmul.f32 %v2844_v17, %v683_v0  ;;  %v1336_v39 = vadd.f32 %v1304_v63, %v1235_v33  ;;  %v3411_v49 = vld [vmem:[#allocation2 + $0x78] sm:$0xff]  ;;  %872 = vst.msk [vmem:[#allocation2 + $0x140] sm:$0xff] %vm830_vm0, %v804_v42 }
  0xce   : > { %v1757_v35 = vadd.f32 %v1725_v26, %v1656_v12  ;;  %v3413_v58 = vld [vmem:[#allocation2 + $0x79] sm:$0xff]  ;;  %v931_v18 = vmul.f32 %v2905_v14, %v3181_v56  ;;  %v1000_v47 = vmul.f32 %v2910_v15, %v3229_v10  ;;  %v1508_v62 = vmul.f32 %v2944_v30, %v3411_v49  ;;  %v707_v10 = vld [vmem:[%s2829_s26 + $0x148] sm:$0x3] }
  0xcf   : > { %v3415_v34 = vld [vmem:[#allocation2 + $0x7a] sm:$0xff]  ;;  %v1148_v51 = vadd.f32 %v1116_v21, %v1047_v27  ;;  %v1320_v36 = vmul.f32 %v2927_v24, %v3324_v54  ;;  %v1421_v20 = vmul.f32 %v2932_v25, %v3326_v29  ;;  %v1437_v50 = vadd.f32 %v1405_v48, %v1336_v39 }
  0xd0   : > { %2476 = vmatmul.mubr.msk.f32.gmra.mrb[4].mxu1 %vm830_vm0, %v1757_v35  ;;  %v781_v46 = vadd.f32 %v733_v60, %v623_v43  ;;  %v1032_v28 = vadd.f32 %v1000_v47, %v931_v18  ;;  %v1101_v56 = vmul.f32 %v2917_v22, %v3231_v37  ;;  %v1609_v63 = vmul.f32 %v2949_v31, %v3413_v58  ;;  %v3443_v26 = vld [vmem:[#allocation2 + $0x80] sm:$0xff]  ;;  %v575_v18 = vld [vmem:[%s2823_s16 + $0x98] sm:$0xff] }
  0xd1   : > { %v1710_v9 = vmul.f32 %v2962_v38, %v3415_v34  ;;  %v1251_v16 = vadd.f32 %v1219_v4, %v1148_v51  ;;  %v1204_v5 = vmul.f32 %v2922_v23, %v3312_v45  ;;  %v1540_v19 = vadd.f32 %v1508_v62, %v1437_v50  ;;  %v574_v4 = vld [vmem:[%s2823_s16 + $0x90] sm:$0xff] }
  0xd2   : > { %849 = vst.msk [vmem:[#allocation2 + $0x88] sm:$0x3] %vm833_vm1, %v781_v46  ;;  %v1133_v41 = vadd.f32 %v1101_v56, %v1032_v28  ;;  %v1305_v59 = vmul.f32 %v2927_v24, %v3349_v6  ;;  %v647_v37 = vmul.f32 %v2839_v13, %v597_v53  ;;  %v757_v48 = vmul.f32 %v2844_v17, %v707_v10 }
  0xd3   : > { %v1352_v0 = vadd.f32 %v1320_v36, %v1251_v16  ;;  %v947_v2 = vmul.f32 %v2905_v14, %v3219_v57  ;;  %v1016_v40 = vmul.f32 %v2910_v15, %v3253_v44  ;;  %v1641_v12 = vadd.f32 %v1609_v63, %v1540_v19  ;;  %v684_v36 = vld [vmem:[%s2829_s26 + $0x90] sm:$0xff] }
  0xd4   : > { %v3450_v33 = vld [vmem:[#allocation2 + $0x138] sm:$0xff]  ;;  %v1236_v42 = vadd.f32 %v1204_v5, %v1133_v41  ;;  %v1406_v21 = vmul.f32 %v2932_v25, %v3358_v55  ;;  %v1117_v27 = vmul.f32 %v2917_v22, %v3255_v7  ;;  %v805_v35 = vadd.f32 %v757_v48, %v647_v37  ;;  %v3490_v48 = vld [vmem:[#allocation2 + $0x140] sm:$0xff] }
  0xd5   : > { %v1453_v43 = vadd.f32 %v1421_v20, %v1352_v0  ;;  %v1524_v57 = vmul.f32 %v2944_v30, %v3450_v33  ;;  %v3459_v60 = vld [vmem:[#allocation2 + $0x139] sm:$0xff]  ;;  %v1048_v39 = vadd.f32 %v1016_v40, %v947_v2  ;;  %v1742_v47 = vadd.f32 %v1710_v9, %v1641_v12  ;;  %v598_v40 = vld [vmem:[%s2823_s16 + $0x150] sm:$0xff] }
  0xd6   : > { %v3461_v44 = vld [vmem:[#allocation2 + $0x13a] sm:$0xff]  ;;  %v1337_v62 = vadd.f32 %v1305_v59, %v1236_v42  ;;  %v1509_v51 = vmul.f32 %v2944_v30, %v3443_v26  ;;  %v1220_v7 = vmul.f32 %v2922_v23, %v3351_v3  ;;  %v1625_v50 = vmul.f32 %v2949_v31, %v3459_v60  ;;  %873 = vst.msk [vmem:[#allocation2 + $0x148] sm:$0x3] %vm833_vm1, %v805_v35 }
  0xd7   : > { %v685_v20 = vld [vmem:[%s2829_s26 + $0x98] sm:$0xff]  ;;  %v1556_v53 = vadd.f32 %v1524_v57, %v1453_v43  ;;  %v1726_v46 = vmul.f32 %v2962_v38, %v3461_v44  ;;  %v1149_v28 = vadd.f32 %v1117_v27, %v1048_v39  ;;  %2454 = vmatprep.mubr.msk.f32.mxu0 %vm830_vm0, %v1742_v47  ;;  %v1321_v10 = vmul.f32 %v2927_v24, %v3381_v8  ;;  %v708_v43 = vld [vmem:[%s2829_s26 + $0x150] sm:$0xff] }
  0xd8   : > { %v1438_v56 = vadd.f32 %v1406_v21, %v1337_v62  ;;  %v624_v23 = vmul.f32 %v2839_v13, %v574_v4  ;;  %v625_v63 = vmul.f32 %v2839_v13, %v575_v18  ;;  %v734_v41 = vmul.f32 %v2844_v17, %v684_v36  ;;  %v599_v4 = vld [vmem:[%s2823_s16 + $0x158] sm:$0xff] }
  0xd9   : > { %v1657_v9 = vadd.f32 %v1625_v50, %v1556_v53  ;;  %v3480_v16 = vld [vmem:[#allocation2 + $0x81] sm:$0xff]  ;;  %v1252_v19 = vadd.f32 %v1220_v7, %v1149_v28  ;;  %v735_v59 = vmul.f32 %v2844_v17, %v685_v20  ;;  %v1422_v0 = vmul.f32 %v2932_v25, %v3383_v1  ;;  %v709_v25 = vld [vmem:[%s2829_s26 + $0x158] sm:$0xff]  ;;  %v3530_v28 = vld [vmem:[%s4177_s5] ss:$0 sm:$0xff] }
  0xda   : > { %v3482_v5 = vld [vmem:[#allocation2 + $0x82] sm:$0xff]  ;;  %v1541_v37 = vadd.f32 %v1509_v51, %v1438_v56  ;;  %v1610_v24 = vmul.f32 %v2949_v31, %v3480_v16  ;;  %v932_v2 = vmul.f32 %v2905_v14, %v3279_v61  ;;  %v782_v21 = vadd.f32 %v734_v41, %v624_v23  ;;  %v3537_v56 = vld [vmem:[%s4177_s5 + $0x1] ss:$0 sm:$0xff] }
  0xdb   : > { %v1758_v12 = vadd.f32 %v1726_v46, %v1657_v9  ;;  %v1353_v42 = vadd.f32 %v1321_v10, %v1252_v19  ;;  %v783_v27 = vadd.f32 %v735_v59, %v625_v63  ;;  %v1711_v35 = vmul.f32 %v2962_v38, %v3482_v5  ;;  %v576_v23 = vld [vmem:[%s2823_s16 + $0xa0] sm:$0x3]  ;;  %v3548_v41 = vld [vmem:[%s4177_s5 + $0x5] ss:$0 sm:$0xff] }
  0xdc   : > { %v1642_v57 = vadd.f32 %v1610_v24, %v1541_v37  ;;  %v1001_v39 = vmul.f32 %v2910_v15, %v3288_v11  ;;  %v1525_v14 = vmul.f32 %v2944_v30, %v3490_v48  ;;  %850 = vst.msk [vmem:[#allocation2 + $0x90] sm:$0xff] %vm830_vm0, %v782_v21  ;;  %v1102_v61 = vmul.f32 %v2917_v22, %v3290_v32  ;;  %v3521_v22 = vld [vmem:[%s4177_s5 + $0x4] ss:$0 sm:$0xff]  ;;  %v686_v63 = vld [vmem:[%s2829_s26 + $0xa0] sm:$0x3] }
  0xdd   : > { %2478 = vmatprep.mubr.msk.f32.mxu1 %vm830_vm0, %v1758_v12  ;;  %v1454_v18 = vadd.f32 %v1422_v0, %v1353_v42  ;;  %851 = vst.msk [vmem:[#allocation2 + $0x98] sm:$0xff] %vm830_vm0, %v783_v27  ;;  %v648_v47 = vmul.f32 %v2839_v13, %v598_v40  ;;  %v3510_v51 = vld [vmem:[#allocation2 + $0x141] sm:$0xff]  ;;  %v649_v7 = vmul.f32 %v2839_v13, %v599_v4 }
  0xde   : > { %v1743_v62 = vadd.f32 %v1711_v35, %v1642_v57  ;;  %v3512_v15 = vld [vmem:[#allocation2 + $0x142] sm:$0xff]  ;;  %v1033_v11 = vadd.f32 %v1001_v39, %v932_v2  ;;  %v758_v30 = vmul.f32 %v2844_v17, %v708_v43  ;;  %v1626_v20 = vmul.f32 %v2949_v31, %v3510_v51  ;;  %v600_v27 = vld [vmem:[%s2823_s16 + $0x160] sm:$0x3] }
  0xdf   : > { %v1557_v36 = vadd.f32 %v1525_v14, %v1454_v18  ;;  %v1205_v32 = vmul.f32 %v3521_v22, %v3411_v49  ;;  %v759_v53 = vmul.f32 %v2844_v17, %v709_v25  ;;  %v948_v31 = vmul.f32 %v3530_v28, %v3316_v52  ;;  %v3563_v0 = vld [vmem:[%s4177_s5 + $0x2] ss:$0 sm:$0xff] }
  0xe0   : > { %2455 = vmatmul.mubr.msk.f32.gmra.mrb[6].mxu0 %vm830_vm0, %v1743_v62  ;;  %v1134_v50 = vadd.f32 %v1102_v61, %v1033_v11  ;;  %v806_v46 = vadd.f32 %v758_v30, %v648_v47  ;;  %v1017_v10 = vmul.f32 %v3537_v56, %v3324_v54  ;;  %v1727_v19 = vmul.f32 %v2962_v38, %v3512_v15  ;;  %v3555_v54 = vld [vmem:[%s4177_s5 + $0x6] ss:$0 sm:$0xff]  ;;  %v710_v47 = vld [vmem:[%s2829_s26 + $0x160] sm:$0x3]  ;;  %v3594_v11 = vld [vmem:[%s4177_s5 + $0x8] ss:$0 sm:$0xff] }
  0xe1   : > { %v1658_v9 = vadd.f32 %v1626_v20, %v1557_v36  ;;  %v1306_v52 = vmul.f32 %v3548_v41, %v3413_v58  ;;  %v807_v59 = vadd.f32 %v759_v53, %v649_v7  ;;  %v1407_v24 = vmul.f32 %v3555_v54, %v3415_v34  ;;  %v3601_v36 = vld [vmem:[%s4177_s5 + $0x9] ss:$0 sm:$0xff]  ;;  %v3608_v20 = vld [vmem:[%s4177_s5 + $0xa] ss:$0 sm:$0xff] }
  0xe2   : > { %v1237_v37 = vadd.f32 %v1205_v32, %v1134_v50  ;;  %874 = vst.msk [vmem:[#allocation2 + $0x150] sm:$0xff] %vm830_vm0, %v806_v46  ;;  %v1049_v38 = vadd.f32 %v1017_v10, %v948_v31  ;;  %v1118_v2 = vmul.f32 %v3563_v0, %v3326_v29  ;;  %v626_v12 = vmul.f32 %v2839_v13, %v576_v23 }
  0xe3   : > { %v1759_v40 = vadd.f32 %v1727_v19, %v1658_v9  ;;  %875 = vst.msk [vmem:[#allocation2 + $0x158] sm:$0xff] %vm830_vm0, %v807_v59  ;;  %v736_v42 = vmul.f32 %v2844_v17, %v686_v63  ;;  %v933_v21 = vmul.f32 %v3530_v28, %v3312_v45  ;;  %v3573_v43 = vld [vmem:[#allocation2 + $0x90] sm:$0xff]  ;;  %v1221_v39 = vmul.f32 %v3521_v22, %v3450_v33 }
  0xe4   : > { %v1338_v4 = vadd.f32 %v1306_v52, %v1237_v37  ;;  %v3575_v57 = vld [vmem:[#allocation2 + $0x91] sm:$0xff]  ;;  %v1150_v29 = vadd.f32 %v1118_v2, %v1049_v38  ;;  %v1002_v25 = vmul.f32 %v3537_v56, %v3349_v6  ;;  %v1322_v45 = vmul.f32 %v3548_v41, %v3459_v60 }
  0xe5   : > { %v3577_v35 = vld [vmem:[#allocation2 + $0x92] sm:$0xff]  ;;  %2479 = vmatmul.mubr.msk.f32.gmra.mrb[6].mxu1 %vm830_vm0, %v1759_v40  ;;  %v1423_v18 = vmul.f32 %v3555_v54, %v3461_v44  ;;  %v784_v14 = vadd.f32 %v736_v42, %v626_v12  ;;  %v1103_v61 = vmul.f32 %v3563_v0, %v3358_v55  ;;  %v1510_v6 = vmul.f32 %v3594_v11, %v3573_v43 }
  0xe6   : > { %v1439_v62 = vadd.f32 %v1407_v24, %v1338_v4  ;;  %v1253_v7 = vadd.f32 %v1221_v39, %v1150_v29  ;;  %v1034_v30 = vadd.f32 %v1002_v25, %v933_v21  ;;  %v1611_v55 = vmul.f32 %v3601_v36, %v3575_v57  ;;  %v3616_v23 = vld [vmem:[#allocation2 + $0x98] sm:$0xff]  ;;  %v577_v21 = vld [vmem:[%s2823_s16 + $0xa8] sm:$0xff]  ;;  %v578_v29 = vld [vmem:[%s2823_s16 + $0xb0] sm:$0xff] }
  0xe7   : > { %v1712_v32 = vmul.f32 %v3608_v20, %v3577_v35  ;;  %852 = vst.msk [vmem:[#allocation2 + $0xa0] sm:$0x3] %vm833_vm1, %v784_v14  ;;  %v1206_v53 = vmul.f32 %v3521_v22, %v3443_v26  ;;  %v650_v50 = vmul.f32 %v2839_v13, %v600_v27  ;;  %v760_v63 = vmul.f32 %v2844_v17, %v710_v47  ;;  %v687_v39 = vld [vmem:[%s2829_s26 + $0xa8] sm:$0xff] }
  0xe8   : > { %v1542_v46 = vadd.f32 %v1510_v6, %v1439_v62  ;;  %v1354_v31 = vadd.f32 %v1322_v45, %v1253_v7  ;;  %v1135_v10 = vadd.f32 %v1103_v61, %v1034_v30  ;;  %v1307_v19 = vmul.f32 %v3548_v41, %v3480_v16  ;;  %v688_v61 = vld [vmem:[%s2829_s26 + $0xb0] sm:$0xff] }
  0xe9   : > { %v3619_v9 = vld [vmem:[#allocation2 + $0x150] sm:$0xff]  ;;  %v1408_v52 = vmul.f32 %v3555_v54, %v3482_v5  ;;  %v949_v59 = vmul.f32 %v3530_v28, %v3351_v3  ;;  %v1018_v37 = vmul.f32 %v3537_v56, %v3381_v8  ;;  %v1511_v27 = vmul.f32 %v3594_v11, %v3616_v23 }
  0xea   : > { %v1643_v24 = vadd.f32 %v1611_v55, %v1542_v46  ;;  %v1455_v38 = vadd.f32 %v1423_v18, %v1354_v31  ;;  %v1526_v2 = vmul.f32 %v3594_v11, %v3619_v9  ;;  %v3631_v40 = vld [vmem:[#allocation2 + $0x151] sm:$0xff]  ;;  %v1238_v42 = vadd.f32 %v1206_v53, %v1135_v10 }
  0xeb   : > { %v3633_v12 = vld [vmem:[#allocation2 + $0x152] sm:$0xff]  ;;  %v808_v4 = vadd.f32 %v760_v63, %v650_v50  ;;  %v1050_v3 = vadd.f32 %v1018_v37, %v949_v59  ;;  %v1119_v8 = vmul.f32 %v3563_v0, %v3383_v1  ;;  %v1627_v18 = vmul.f32 %v3601_v36, %v3631_v40 }
  0xec   : > { %v1744_v25 = vadd.f32 %v1712_v32, %v1643_v24  ;;  %v1558_v45 = vadd.f32 %v1526_v2, %v1455_v38  ;;  %v1339_v14 = vadd.f32 %v1307_v19, %v1238_v42  ;;  %v1728_v47 = vmul.f32 %v3608_v20, %v3633_v12  ;;  %v3662_v63 = vld [vmem:[#allocation2 + $0x158] sm:$0xff]  ;;  %v601_v38 = vld [vmem:[%s2823_s16 + $0x168] sm:$0xff]  ;;  %v602_v2 = vld [vmem:[%s2823_s16 + $0x170] sm:$0xff] }
  0xed   : > { %876 = vst.msk [vmem:[#allocation2 + $0x160] sm:$0x3] %vm833_vm1, %v808_v4  ;;  %v1151_v62 = vadd.f32 %v1119_v8, %v1050_v3  ;;  %v1222_v6 = vmul.f32 %v3521_v22, %v3490_v48  ;;  %v627_v1 = vmul.f32 %v2839_v13, %v577_v21  ;;  %v628_v32 = vmul.f32 %v2839_v13, %v578_v29  ;;  %v711_v8 = vld [vmem:[%s2829_s26 + $0x168] sm:$0xff]  ;;  %v712_v29 = vld [vmem:[%s2829_s26 + $0x170] sm:$0xff] }
  0xee   : > { %2457 = vmatprep.mubr.msk.f32.mxu0 %vm830_vm0, %v1744_v25  ;;  %v1659_v7 = vadd.f32 %v1627_v18, %v1558_v45  ;;  %v1440_v30 = vadd.f32 %v1408_v52, %v1339_v14  ;;  %v3652_v55 = vld [vmem:[#allocation2 + $0x99] sm:$0xff]  ;;  %v737_v53 = vmul.f32 %v2844_v17, %v687_v39  ;;  %v1323_v10 = vmul.f32 %v3548_v41, %v3510_v51 }
  0xef   : > { %v1612_v50 = vmul.f32 %v3601_v36, %v3652_v55  ;;  %v3658_v46 = vld [vmem:[#allocation2 + $0x9a] sm:$0xff]  ;;  %v1254_v31 = vadd.f32 %v1222_v6, %v1151_v62  ;;  %v738_v19 = vmul.f32 %v2844_v17, %v688_v61  ;;  %v934_v24 = vmul.f32 %v3530_v28, %v3411_v49 }
  0xf0   : > { %v1760_v52 = vadd.f32 %v1728_v47, %v1659_v7  ;;  %v1543_v59 = vadd.f32 %v1511_v27, %v1440_v30  ;;  %v785_v37 = vadd.f32 %v737_v53, %v627_v1  ;;  %v1424_v21 = vmul.f32 %v3555_v54, %v3512_v15 }
  0xf1   : > { %v1355_v42 = vadd.f32 %v1323_v10, %v1254_v31  ;;  %v786_v4 = vadd.f32 %v738_v19, %v628_v32  ;;  %v1003_v3 = vmul.f32 %v3537_v56, %v3413_v58  ;;  %v1713_v27 = vmul.f32 %v3608_v20, %v3658_v46  ;;  %v689_v31 = vld [vmem:[%s2829_s26 + $0xb8] sm:$0x3] }
  0xf2   : > { %2481 = vmatprep.mubr.msk.f32.mxu1 %vm830_vm0, %v1760_v52  ;;  %v1644_v39 = vadd.f32 %v1612_v50, %v1543_v59  ;;  %v1527_v49 = vmul.f32 %v3594_v11, %v3662_v63  ;;  %853 = vst.msk [vmem:[#allocation2 + $0xa8] sm:$0xff] %vm830_vm0, %v785_v37  ;;  %v1104_v25 = vmul.f32 %v3563_v0, %v3415_v34  ;;  %v579_v50 = vld [vmem:[%s2823_s16 + $0xb8] sm:$0x3] }
  0xf3   : > { %v1456_v45 = vadd.f32 %v1424_v21, %v1355_v42  ;;  %854 = vst.msk [vmem:[#allocation2 + $0xb0] sm:$0xff] %vm830_vm0, %v786_v4  ;;  %v1035_v58 = vadd.f32 %v1003_v3, %v934_v24  ;;  %v651_v18 = vmul.f32 %v2839_v13, %v601_v38  ;;  %v652_v14 = vmul.f32 %v2839_v13, %v602_v2 }
  0xf4   : > { %v1745_v61 = vadd.f32 %v1713_v27, %v1644_v39  ;;  %v3686_v47 = vld [vmem:[#allocation2 + $0x159] sm:$0xff]  ;;  %v761_v6 = vmul.f32 %v2844_v17, %v711_v8  ;;  %v762_v1 = vmul.f32 %v2844_v17, %v712_v29  ;;  %v950_v34 = vmul.f32 %v3530_v28, %v3450_v33 }
  0xf5   : > { %v3688_v62 = vld [vmem:[#allocation2 + $0x15a] sm:$0xff]  ;;  %v1559_v7 = vadd.f32 %v1527_v49, %v1456_v45  ;;  %v1628_v30 = vmul.f32 %v3601_v36, %v3686_v47  ;;  %v1136_v32 = vadd.f32 %v1104_v25, %v1035_v58  ;;  %v1207_v53 = vmul.f32 %v3521_v22, %v3573_v43  ;;  %v603_v45 = vld [vmem:[%s2823_s16 + $0x178] sm:$0x3]  ;;  %s2403_s16 = sadd.s32 384, %s2817_s11 }
  0xf6   : > { %2458 = vmatmul.mubr.msk.f32.gmra.mrb[8].mxu0 %vm830_vm0, %v1745_v61  ;;  %v1308_v10 = vmul.f32 %v3548_v41, %v3575_v57  ;;  %v809_v19 = vadd.f32 %v761_v6, %v651_v18  ;;  %v810_v52 = vadd.f32 %v762_v1, %v652_v14  ;;  %v1019_v33 = vmul.f32 %v3537_v56, %v3459_v60  ;;  %v713_v61 = vld [vmem:[%s2829_s26 + $0x178] sm:$0x3]  ;;  %s3777_s23 = scalar_lea.vmem %s4174_s2, %s2403_s16  ;;  %s3782_s12 = scalar_lea.vmem %s4176_s4, %s2403_s16 }
  0xf7   : > { %v1660_v59 = vadd.f32 %v1628_v30, %v1559_v7  ;;  %v1729_v37 = vmul.f32 %v3608_v20, %v3688_v62  ;;  %v1239_v24 = vadd.f32 %v1207_v53, %v1136_v32  ;;  %v1409_v38 = vmul.f32 %v3555_v54, %v3577_v35  ;;  %s4116_s26 = scalar_lea.hbm %s4180_s8, %s2406_s21 }
  0xf8   : > { %877 = vst.msk [vmem:[#allocation2 + $0x168] sm:$0xff] %vm830_vm0, %v809_v19  ;;  %878 = vst.msk [vmem:[#allocation2 + $0x170] sm:$0xff] %vm830_vm0, %v810_v52  ;;  %v1051_v2 = vadd.f32 %v1019_v33, %v950_v34  ;;  %v1120_v42 = vmul.f32 %v3563_v0, %v3461_v44  ;;  %v629_v21 = vmul.f32 %v2839_v13, %v579_v50 }
  0xf9   : > { %v739_v60 = vmul.f32 %v2844_v17, %v689_v31  ;;  %v1761_v4 = vadd.f32 %v1729_v37, %v1660_v59  ;;  %v1340_v3 = vadd.f32 %v1308_v10, %v1239_v24  ;;  %v3715_v8 = vld [vmem:[#allocation2 + $0xa8] sm:$0xff]  ;;  %v935_v29 = vmul.f32 %v3530_v28, %v3443_v26 }
  0xfa   : > { %v1004_v39 = vmul.f32 %v3537_v56, %v3480_v16  ;;  %v3721_v27 = vld [vmem:[#allocation2 + $0xa9] sm:$0xff]  ;;  %v1152_v49 = vadd.f32 %v1120_v42, %v1051_v2  ;;  %v1223_v44 = vmul.f32 %v3521_v22, %v3619_v9  ;;  %v1512_v18 = vmul.f32 %v3594_v11, %v3715_v8 }
  0xfb   : > { %v787_v25 = vadd.f32 %v739_v60, %v629_v21  ;;  %2482 = vmatmul.mubr.msk.f32.gmra.mrb[8].mxu1 %vm830_vm0, %v1761_v4  ;;  %v1441_v58 = vadd.f32 %v1409_v38, %v1340_v3  ;;  %v1105_v26 = vmul.f32 %v3563_v0, %v3482_v5  ;;  %v1613_v16 = vmul.f32 %v3601_v36, %v3721_v27  ;;  %v3734_v6 = vld [vmem:[#allocation2 + $0xaa] sm:$0xff] }
  0xfc   : > { %v1036_v14 = vadd.f32 %v1004_v39, %v935_v29  ;;  %v1255_v1 = vadd.f32 %v1223_v44, %v1152_v49  ;;  %v1324_v34 = vmul.f32 %v3548_v41, %v3631_v40  ;;  %v1425_v7 = vmul.f32 %v3555_v54, %v3633_v12  ;;  %v3757_v2 = vld [vmem:[#allocation2 + $0xb0] sm:$0xff] }
  0xfd   : > { %855 = vst.msk [vmem:[#allocation2 + $0xb8] sm:$0x3] %vm833_vm1, %v787_v25  ;;  %v1544_v30 = vadd.f32 %v1512_v18, %v1441_v58  ;;  %v1208_v5 = vmul.f32 %v3521_v22, %v3616_v23  ;;  %v653_v53 = vmul.f32 %v2839_v13, %v603_v45  ;;  %v763_v31 = vmul.f32 %v2844_v17, %v713_v61 }
  0xfe   : > { %v1137_v32 = vadd.f32 %v1105_v26, %v1036_v14  ;;  %v1356_v50 = vadd.f32 %v1324_v34, %v1255_v1  ;;  %v951_v10 = vmul.f32 %v3530_v28, %v3490_v48  ;;  %v1020_v19 = vmul.f32 %v3537_v56, %v3510_v51 }
  0xff   : > { %v1645_v52 = vadd.f32 %v1613_v16, %v1544_v30  ;;  %v1714_v33 = vmul.f32 %v3608_v20, %v3734_v6  ;;  %v3751_v59 = vld [vmem:[#allocation2 + $0x168] sm:$0xff]  ;;  %v1309_v38 = vmul.f32 %v3548_v41, %v3652_v55  ;;  %v1410_v51 = vmul.f32 %v3555_v54, %v3658_v46  ;;  %v3790_v26 = vld [vmem:[#allocation2 + $0x170] sm:$0xff] }
 0x100   : > { %v3753_v37 = vld [vmem:[#allocation2 + $0x169] sm:$0xff]  ;;  %v1240_v24 = vadd.f32 %v1208_v5, %v1137_v32  ;;  %v1457_v42 = vadd.f32 %v1425_v7, %v1356_v50  ;;  %v1528_v48 = vmul.f32 %v3594_v11, %v3751_v59  ;;  %v1121_v21 = vmul.f32 %v3563_v0, %v3512_v15  ;;  %v654_v50 = vld [vmem:[%s3777_s23] sm:$0xff] }
 0x101   : > { %v1746_v60 = vadd.f32 %v1714_v33, %v1645_v52  ;;  %v3766_v4 = vld [vmem:[#allocation2 + $0x16a] sm:$0xff]  ;;  %v811_v29 = vadd.f32 %v763_v31, %v653_v53  ;;  %v1052_v39 = vadd.f32 %v1020_v19, %v951_v10  ;;  %v1629_v44 = vmul.f32 %v3601_v36, %v3753_v37 }
 0x102   : > { %v1341_v3 = vadd.f32 %v1309_v38, %v1240_v24  ;;  %v1560_v49 = vadd.f32 %v1528_v48, %v1457_v42  ;;  %v1513_v25 = vmul.f32 %v3594_v11, %v3757_v2  ;;  %v1224_v45 = vmul.f32 %v3521_v22, %v3662_v63  ;;  %v655_v31 = vld [vmem:[%s3777_s23 + $0x8] sm:$0xff] }
 0x103   : > { %2460 = vmatprep.mubr.msk.f32.mxu0 %vm830_vm0, %v1746_v60  ;;  %879 = vst.msk [vmem:[#allocation2 + $0x178] sm:$0x3] %vm833_vm1, %v811_v29  ;;  %v1153_v14 = vadd.f32 %v1121_v21, %v1052_v39  ;;  %v936_v61 = vmul.f32 %v3530_v28, %v3573_v43  ;;  %v1005_v16 = vmul.f32 %v3537_v56, %v3575_v57  ;;  %v812_v57 = vld [vmem:[%s3782_s12] sm:$0xff]  ;;  %v813_v24 = vld [vmem:[%s3782_s12 + $0x8] sm:$0xff] }
 0x104   : > { %v1442_v15 = vadd.f32 %v1410_v51, %v1341_v3  ;;  %v3785_v58 = vld [vmem:[#allocation2 + $0xb1] sm:$0xff]  ;;  %v1661_v1 = vadd.f32 %v1629_v44, %v1560_v49  ;;  %v1730_v34 = vmul.f32 %v3608_v20, %v3766_v4  ;;  %v1325_v30 = vmul.f32 %v3548_v41, %v3686_v47  ;;  %v3822_v44 = vld [vmem:[#allocation2 + $0xc0] sm:$0xff] }
 0x105   : > { %v3787_v18 = vld [vmem:[#allocation2 + $0xb2] sm:$0xff]  ;;  %v1614_v7 = vmul.f32 %v3601_v36, %v3785_v58  ;;  %v1256_v5 = vadd.f32 %v1224_v45, %v1153_v14  ;;  %v1037_v53 = vadd.f32 %v1005_v16, %v936_v61  ;;  %v1106_v43 = vmul.f32 %v3563_v0, %v3577_v35 }
 0x106   : > { %v1545_v32 = vadd.f32 %v1513_v25, %v1442_v15  ;;  %v1762_v10 = vadd.f32 %v1730_v34, %v1661_v1  ;;  %v1715_v19 = vmul.f32 %v3608_v20, %v3787_v18  ;;  %v1426_v52 = vmul.f32 %v3555_v54, %v3688_v62 }
 0x107   : > { %v1529_v33 = vmul.f32 %v3594_v11, %v3790_v26  ;;  %v1357_v42 = vadd.f32 %v1325_v30, %v1256_v5  ;;  %v1138_v48 = vadd.f32 %v1106_v43, %v1037_v53  ;;  %v1209_v35 = vmul.f32 %v3521_v22, %v3715_v8 }
 0x108   : > { %v1646_v38 = vadd.f32 %v1614_v7, %v1545_v32  ;;  %2484 = vmatprep.mubr.msk.f32.mxu1 %vm830_vm0, %v1762_v10  ;;  %v1310_v51 = vmul.f32 %v3548_v41, %v3721_v27  ;;  %v660_v21 = vmul.f32 %v654_v50, %v2839_v13  ;;  %v661_v60 = vmul.f32 %v655_v31, %v2839_v13  ;;  %v3838_v32 = vld [vmem:[#allocation2 + $0xc1] sm:$0xff] }
 0x109   : > { %v818_v3 = vmul.f32 %v812_v57, %v2844_v17  ;;  %v1458_v39 = vadd.f32 %v1426_v52, %v1357_v42  ;;  %v1241_v49 = vadd.f32 %v1209_v35, %v1138_v48  ;;  %v819_v25 = vmul.f32 %v813_v24, %v2844_v17  ;;  %v656_v24 = vld [vmem:[%s3777_s23 + $0x10] sm:$0x3] }
 0x10a   : > { %v1747_v29 = vadd.f32 %v1715_v19, %v1646_v38  ;;  %v3825_v45 = vld [vmem:[#allocation2 + $0x171] sm:$0xff]  ;;  %v952_v61 = vmul.f32 %v3530_v28, %v3619_v9  ;;  %v1021_v16 = vmul.f32 %v3537_v56, %v3631_v40  ;;  %v1411_v30 = vmul.f32 %v3555_v54, %v3734_v6  ;;  %v3842_v9 = vld [vmem:[#allocation2 + $0xc2] sm:$0xff] }
 0x10b   : > { %v3827_v15 = vld [vmem:[#allocation2 + $0x172] sm:$0xff]  ;;  %v824_v14 = vadd.f32 %v818_v3, %v660_v21  ;;  %v1561_v1 = vadd.f32 %v1529_v33, %v1458_v39  ;;  %v1630_v34 = vmul.f32 %v3601_v36, %v3825_v45  ;;  %v1342_v7 = vadd.f32 %v1310_v51, %v1241_v49  ;;  %v814_v38 = vld [vmem:[%s3782_s12 + $0x10] sm:$0x3] }
 0x10c   : > { %2461 = vmatmul.mubr.msk.f32.gmra.mrb[10].mxu0 %vm830_vm0, %v1747_v29  ;;  %v1514_v5 = vmul.f32 %v3594_v11, %v3822_v44  ;;  %v825_v40 = vadd.f32 %v819_v25, %v661_v60  ;;  %v1053_v53 = vadd.f32 %v1021_v16, %v952_v61  ;;  %v1122_v43 = vmul.f32 %v3563_v0, %v3633_v12  ;;  %v3873_v61 = vld [vmem:[#allocation2 + $0xc8] sm:$0xff] }
 0x10d   : > { %881 = vst.msk [vmem:[#allocation2 + $0x180] sm:$0xff] %vm830_vm0, %v824_v14  ;;  %v1662_v50 = vadd.f32 %v1630_v34, %v1561_v1  ;;  %v1731_v31 = vmul.f32 %v3608_v20, %v3827_v15  ;;  %v1443_v57 = vadd.f32 %v1411_v30, %v1342_v7  ;;  %v937_v10 = vmul.f32 %v3530_v28, %v3616_v23 }
 0x10e   : > { %v1615_v19 = vmul.f32 %v3601_v36, %v3838_v32  ;;  %882 = vst.msk [vmem:[#allocation2 + $0x188] sm:$0xff] %vm830_vm0, %v825_v40  ;;  %v1154_v52 = vadd.f32 %v1122_v43, %v1053_v53  ;;  %v1225_v33 = vmul.f32 %v3521_v22, %v3751_v59  ;;  %v1006_v12 = vmul.f32 %v3537_v56, %v3652_v55 }
 0x10f   : > { %v1763_v42 = vadd.f32 %v1731_v31, %v1662_v50  ;;  %v1546_v48 = vadd.f32 %v1514_v5, %v1443_v57  ;;  %v1716_v35 = vmul.f32 %v3608_v20, %v3842_v9  ;;  %v1326_v23 = vmul.f32 %v3548_v41, %v3753_v37  ;;  %v3885_v5 = vld [vmem:[#allocation2 + $0xc9] sm:$0xff] }
 0x110   : > { %v1257_v51 = vadd.f32 %v1225_v33, %v1154_v52  ;;  %v1427_v21 = vmul.f32 %v3555_v54, %v3766_v4  ;;  %v1038_v60 = vadd.f32 %v1006_v12, %v937_v10  ;;  %v1107_v3 = vmul.f32 %v3563_v0, %v3658_v46  ;;  %v3896_v10 = vld [vmem:[#allocation2 + $0xca] sm:$0xff] }
 0x111   : > { %2485 = vmatmul.mubr.msk.f32.gmra.mrb[10].mxu1 %vm830_vm0, %v1763_v42  ;;  %v1647_v55 = vadd.f32 %v1615_v19, %v1546_v48  ;;  %v1210_v29 = vmul.f32 %v3521_v22, %v3757_v2  ;;  %v662_v39 = vmul.f32 %v656_v24, %v2839_v13  ;;  %v820_v49 = vmul.f32 %v814_v38, %v2844_v17 }
 0x112   : > { %v1358_v25 = vadd.f32 %v1326_v23, %v1257_v51  ;;  %v1139_v14 = vadd.f32 %v1107_v3, %v1038_v60  ;;  %v953_v16 = vmul.f32 %v3530_v28, %v3662_v63  ;;  %v1022_v46 = vmul.f32 %v3537_v56, %v3686_v47  ;;  %v657_v60 = vld [vmem:[%s3777_s23 + $0x18] sm:$0xff]  ;;  %v658_v3 = vld [vmem:[%s3777_s23 + $0x20] sm:$0xff] }
 0x113   : > { %v1748_v1 = vadd.f32 %v1716_v35, %v1647_v55  ;;  %v1311_v7 = vmul.f32 %v3548_v41, %v3785_v58  ;;  %v1412_v30 = vmul.f32 %v3555_v54, %v3787_v18  ;;  %v826_v40 = vadd.f32 %v820_v49, %v662_v39 }
 0x114   : > { %v3879_v34 = vld [vmem:[#allocation2 + $0x180] sm:$0xff]  ;;  %v1459_v53 = vadd.f32 %v1427_v21, %v1358_v25  ;;  %v1242_v63 = vadd.f32 %v1210_v29, %v1139_v14  ;;  %v1054_v50 = vadd.f32 %v1022_v46, %v953_v16  ;;  %v1515_v57 = vmul.f32 %v3594_v11, %v3873_v61  ;;  %v815_v25 = vld [vmem:[%s3782_s12 + $0x18] sm:$0xff] }
 0x115   : > { %v1530_v43 = vmul.f32 %v3594_v11, %v3879_v34  ;;  %2463 = vmatprep.mubr.msk.f32.mxu0 %vm830_vm0, %v1748_v1  ;;  %v3890_v47 = vld [vmem:[#allocation2 + $0x181] sm:$0xff]  ;;  %883 = vst.msk [vmem:[#allocation2 + $0x190] sm:$0x3] %vm833_vm1, %v826_v40  ;;  %v1123_v19 = vmul.f32 %v3563_v0, %v3688_v62  ;;  %v938_v52 = vmul.f32 %v3530_v28, %v3715_v8 }
 0x116   : > { %v3892_v31 = vld [vmem:[#allocation2 + $0x182] sm:$0xff]  ;;  %v1007_v33 = vmul.f32 %v3537_v56, %v3721_v27  ;;  %v1631_v24 = vmul.f32 %v3601_v36, %v3890_v47  ;;  %v1343_v38 = vadd.f32 %v1311_v7, %v1242_v63  ;;  %v1616_v42 = vmul.f32 %v3601_v36, %v3885_v5 }
 0x117   : > { %v1562_v12 = vadd.f32 %v1530_v43, %v1459_v53  ;;  %v1155_v48 = vadd.f32 %v1123_v19, %v1054_v50  ;;  %v1226_v62 = vmul.f32 %v3521_v22, %v3790_v26  ;;  %v1108_v8 = vmul.f32 %v3563_v0, %v3734_v6  ;;  %v816_v6 = vld [vmem:[%s3782_s12 + $0x20] sm:$0xff]  ;;  %v3927_v1 = vld [vmem:[#allocation2 + $0x188] sm:$0xff]  ;;  %v1478_v50 = vld [vmem:[#allocation2 + $0xd8] sm:$0xff] }
 0x118   : > { %v1039_v35 = vadd.f32 %v1007_v33, %v938_v52  ;;  %v1732_v27 = vmul.f32 %v3608_v20, %v3892_v31  ;;  %v1444_v51 = vadd.f32 %v1412_v30, %v1343_v38  ;;  %v1717_v21 = vmul.f32 %v3608_v20, %v3896_v10  ;;  %v1580_v38 = vld [vmem:[#allocation2 + $0xd9] sm:$0xff] }
 0x119   : > { %v1663_v23 = vadd.f32 %v1631_v24, %v1562_v12  ;;  %v1258_v55 = vadd.f32 %v1226_v62, %v1155_v48  ;;  %v1327_v29 = vmul.f32 %v3548_v41, %v3825_v45  ;;  %v1211_v49 = vmul.f32 %v3521_v22, %v3822_v44 }
 0x11a   : > { %v1140_v39 = vadd.f32 %v1108_v8, %v1039_v35  ;;  %v1547_v16 = vadd.f32 %v1515_v57, %v1444_v51  ;;  %v1428_v46 = vmul.f32 %v3555_v54, %v3827_v15  ;;  %v1312_v7 = vmul.f32 %v3548_v41, %v3838_v32 }
 0x11b   : > { %v1764_v14 = vadd.f32 %v1732_v27, %v1663_v23  ;;  %v1359_v30 = vadd.f32 %v1327_v29, %v1258_v55  ;;  %v663_v53 = vmul.f32 %v657_v60, %v2839_v13  ;;  %v664_v43 = vmul.f32 %v658_v3, %v2839_v13  ;;  %v1681_v60 = vld [vmem:[#allocation2 + $0xda] sm:$0xff] }
 0x11c   : > { %v1243_v40 = vadd.f32 %v1211_v49, %v1140_v39  ;;  %v1648_v44 = vadd.f32 %v1616_v42, %v1547_v16  ;;  %v3934_v63 = vld [vmem:[#allocation2 + $0x189] sm:$0xff]  ;;  %v821_v57 = vmul.f32 %v815_v25, %v2844_v17  ;;  %v822_v19 = vmul.f32 %v816_v6, %v2844_v17 }
 0x11d   : > { %2487 = vmatprep.mubr.msk.f32.mxu1 %vm830_vm0, %v1764_v14  ;;  %v954_v52 = vmul.f32 %v3530_v28, %v3751_v59  ;;  %v1460_v32 = vadd.f32 %v1428_v46, %v1359_v30  ;;  %v1531_v33 = vmul.f32 %v3594_v11, %v3927_v1  ;;  %v1413_v24 = vmul.f32 %v3555_v54, %v3842_v9  ;;  %v3944_v48 = vld [vmem:[#allocation2 + $0x18a] sm:$0xff]  ;;  %v659_v25 = vld [vmem:[%s3777_s23 + $0x28] sm:$0x3]  ;;  %s2599_s23 = scalar_lea.vmem %s4118_s22, 4096 }
 0x11e   : > { %v1344_v12 = vadd.f32 %v1312_v7, %v1243_v40  ;;  %v1749_v42 = vadd.f32 %v1717_v21, %v1648_v44  ;;  %v827_v62 = vadd.f32 %v821_v57, %v663_v53  ;;  %v828_v35 = vadd.f32 %v822_v19, %v664_v43  ;;  %v817_v46 = vld [vmem:[%s3782_s12 + $0x28] sm:$0x3]  ;;  %p2600_p11 = scmp.ne.s32.totalorder %s4118_s22, %s2599_s23  ;;  %s2605_s12 = scalar_lea.vmem %s2604_s25, 8192 }
 0x11f   : > { %v1023_v8 = vmul.f32 %v3537_v56, %v3753_v37  ;;  %v1563_v23 = vadd.f32 %v1531_v33, %v1460_v32  ;;  %v1632_v59 = vmul.f32 %v3601_v36, %v3934_v63  ;;  %v1516_v51 = vmul.f32 %v3594_v11, %v1478_v50  ;;  %p2607_p1 = scmp.lt.s32.totalorder %s2605_s12, %s2599_s23 }
 0x120   : > { %v1445_v27 = vadd.f32 %v1413_v24, %v1344_v12  ;;  %2464 = vmatmul.mubr.msk.f32.gmra.mrb[12].mxu0 %vm830_vm0, %v1749_v42  ;;  %v1617_v9 = vmul.f32 %v3601_v36, %v1580_v38  ;;  %884 = vst.msk [vmem:[#allocation2 + $0x198] sm:$0xff] %vm830_vm0, %v827_v62  ;;  %885 = vst.msk [vmem:[#allocation2 + $0x1a0] sm:$0xff] %vm830_vm0, %v828_v35  ;;  %v1124_v37 = vmul.f32 %v3563_v0, %v3766_v4  ;;  %p2601_p12 = pnand %p2600_p11, %p2773_p4 }
 0x121   : > { %v1055_v21 = vadd.f32 %v1023_v8, %v954_v52  ;;  %v939_v3 = vmul.f32 %v3530_v28, %v3757_v2  ;;  %v1664_v55 = vadd.f32 %v1632_v59, %v1563_v23  ;;  %v1733_v29 = vmul.f32 %v3608_v20, %v3944_v48  ;;  %p2608_p2 = por %p2607_p1, %p2606_p0 }
 0x122   : > { %v1548_v39 = vadd.f32 %v1516_v51, %v1445_v27  ;;  %v1008_v49 = vmul.f32 %v3537_v56, %v3785_v58  ;;  %v1718_v6 = vmul.f32 %v3608_v20, %v1681_v60  ;;  %v1227_v16 = vmul.f32 %v3521_v22, %v3879_v34  ;;  %v1682_v27 = vld [vmem:[#allocation2 + $0xe2] sm:$0xff]  ;;  %p2602_p13 = pneg %p2601_p12 }
 0x123   : > { %v1156_v14 = vadd.f32 %v1124_v37, %v1055_v21  ;;  %v1765_v4 = vadd.f32 %v1733_v29, %v1664_v55  ;;  %v1109_v2 = vmul.f32 %v3563_v0, %v3787_v18  ;;  %v1328_v53 = vmul.f32 %v3548_v41, %v3890_v47 }
 0x124   : > { %v1649_v7 = vadd.f32 %v1617_v9, %v1548_v39  ;;  %v1040_v30 = vadd.f32 %v1008_v49, %v939_v3  ;;  %v1212_v58 = vmul.f32 %v3521_v22, %v3873_v61  ;;  %v665_v43 = vmul.f32 %v659_v25, %v2839_v13  ;;  %p2609_p3 = pnand %p2608_p2, %p2602_p13 }
 0x125   : > { %v1259_v40 = vadd.f32 %v1227_v16, %v1156_v14  ;;  %2488 = vmatmul.mubr.msk.f32.gmra.mrb[12].mxu1 %vm830_vm0, %v1765_v4  ;;  %v823_v50 = vmul.f32 %v817_v46, %v2844_v17  ;;  %v955_v57 = vmul.f32 %v3530_v28, %v3790_v26  ;;  %v1429_v18 = vmul.f32 %v3555_v54, %v3892_v31  ;;  %v1479_v28 = vld [vmem:[#allocation2 + $0xe0] sm:$0xff] }
 0x126   : > { %v1750_v44 = vadd.f32 %v1718_v6, %v1649_v7  ;;  %v1141_v34 = vadd.f32 %v1109_v2, %v1040_v30  ;;  %v1024_v47 = vmul.f32 %v3537_v56, %v3825_v45  ;;  %v1313_v32 = vmul.f32 %v3548_v41, %v3885_v5  ;;  %v1581_v5 = vld [vmem:[#allocation2 + $0xe1] sm:$0xff] }
 0x127   : > { %v1360_v19 = vadd.f32 %v1328_v53, %v1259_v40  ;;  %v1494_v61 = vld [vmem:[#allocation2 + $0x198] sm:$0xff]  ;;  %v829_v33 = vadd.f32 %v823_v50, %v665_v43  ;;  %v1414_v31 = vmul.f32 %v3555_v54, %v3896_v10  ;;  %v1125_v45 = vmul.f32 %v3563_v0, %v3827_v15  ;;  %v1495_v21 = vld [vmem:[#allocation2 + $0x1a0] sm:$0xff] }
 0x128   : > { %2466 = vmatprep.mubr.msk.f32.mxu0 %vm830_vm0, %v1750_v44  ;;  %v1596_v13 = vld [vmem:[#allocation2 + $0x199] sm:$0xff]  ;;  %v1244_v52 = vadd.f32 %v1212_v58, %v1141_v34  ;;  %v1532_v12 = vmul.f32 %v3594_v11, %v1494_v61  ;;  %v1056_v56 = vadd.f32 %v1024_v47, %v955_v57  ;;  %v1517_v35 = vmul.f32 %v3594_v11, %v1479_v28 }
 0x129   : > { %v1461_v17 = vadd.f32 %v1429_v18, %v1360_v19  ;;  %v1697_v26 = vld [vmem:[#allocation2 + $0x19a] sm:$0xff]  ;;  %886 = vst.msk [vmem:[#allocation2 + $0x1a8] sm:$0x3] %vm833_vm1, %v829_v33  ;;  %v1633_v42 = vmul.f32 %v3601_v36, %v1596_v13  ;;  %v1228_v23 = vmul.f32 %v3521_v22, %v3927_v1  ;;  %v1618_v60 = vmul.f32 %v3601_v36, %v1581_v5 }
 0x12a   : > { %v1345_v24 = vadd.f32 %v1313_v32, %v1244_v52  ;;  %v1157_v8 = vadd.f32 %v1125_v45, %v1056_v56  ;;  %v1734_v10 = vmul.f32 %v3608_v20, %v1697_v26  ;;  %v1329_v0 = vmul.f32 %v3548_v41, %v3934_v63 }
 0x12b   : > { %v1564_v38 = vadd.f32 %v1532_v12, %v1461_v17  ;;  %v1719_v3 = vmul.f32 %v3608_v20, %v1682_v27  ;;  %v1430_v22 = vmul.f32 %v3555_v54, %v3944_v48  ;;  %v1533_v49 = vmul.f32 %v3594_v11, %v1495_v21  ;;  %v4013_v54 = vld [vmem:[%s4179_s7] ss:$0 sm:$0xff] }
 0x12c   : > { %v1446_v62 = vadd.f32 %v1414_v31, %v1345_v24  ;;  %v1260_v9 = vadd.f32 %v1228_v23, %v1157_v8 }
 0x12d   : > { %v1665_v59 = vadd.f32 %v1633_v42, %v1564_v38 }
 0x12e   : > { %v1549_v51 = vadd.f32 %v1517_v35, %v1446_v62  ;;  %v1361_v55 = vadd.f32 %v1329_v0, %v1260_v9 }
 0x12f   : > { %v1766_v15 = vadd.f32 %v1734_v10, %v1665_v59 }
 0x130   : > { %v1650_v37 = vadd.f32 %v1618_v60, %v1549_v51  ;;  %v1597_v1 = vld [vmem:[#allocation2 + $0x1a1] sm:$0xff]  ;;  %v1462_v39 = vadd.f32 %v1430_v22, %v1361_v55 }
 0x131   : > { %2490 = vmatprep.mubr.msk.f32.mxu1 %vm830_vm0, %v1766_v15  ;;  %v1698_v25 = vld [vmem:[#allocation2 + $0x1a2] sm:$0xff]  ;;  %v1634_v63 = vmul.f32 %v3601_v36, %v1597_v1 }
 0x132   : > { %v1751_v29 = vadd.f32 %v1719_v3, %v1650_v37  ;;  %v1565_v41 = vadd.f32 %v1533_v49, %v1462_v39  ;;  %v1735_v14 = vmul.f32 %v3608_v20, %v1698_v25 }
 0x134   : > { %2467 = vmatmul.mubr.msk.f32.gmra.mrb[14].mxu0 %vm830_vm0, %v1751_v29  ;;  %v1666_v6 = vadd.f32 %v1634_v63, %v1565_v41 }
 0x136   : > { %v1767_v16 = vadd.f32 %v1735_v14, %v1666_v6 }
 0x138   : > { %2491 = vmatmul.mubr.msk.f32.gmra.mrb[14].mxu1 %vm830_vm0, %v1767_v16 }
 0x177   : > { %v2447_v11 = vpop.f32.mrb[0].mxu0 }
 0x178   : > { %v1945_v48 = vadd.f32 %v2447_v11, %v4013_v54  ;;  %v1939_v46 = vpop.f32.mrb[1].mxu0 }
 0x179   : > { %v2471_v4 = vpop.f32.mrb[0].mxu1  ;;  %v1940_v36 = vadd.f32 %v4013_v54, %v1939_v46 }
 0x17a   : > { %v2099_v7 = vmax.f32 %v1945_v48, 0.0  ;;  %v2025_v20 = vadd.f32 %v2471_v4, %v4013_v54  ;;  %v2019_v30 = vpop.f32.mrb[1].mxu1 }
 0x17b   : > { %v2098_v2 = vmax.f32 %v1940_v36, 0.0  ;;  %v2020_v40 = vadd.f32 %v4013_v54, %v2019_v30 }
 0x17c   : > { %2131 = vst.msk [vmem:[%s4021_s6 + $0x8] sm:$0xff] %vm830_vm0, %v2099_v7  ;;  %v2115_v53 = vmax.f32 %v2025_v20, 0.0 }
 0x17d   : > { %2130 = vst.msk [vmem:[%s4021_s6] sm:$0xff] %vm830_vm0, %v2098_v2  ;;  %v2114_v58 = vmax.f32 %v2020_v40, 0.0 }
 0x17e   : > { %2147 = vst.msk [vmem:[%s4021_s6 + $0x88] sm:$0xff] %vm830_vm0, %v2115_v53 }
 0x17f   : > { %2146 = vst.msk [vmem:[%s4021_s6 + $0x80] sm:$0xff] %vm830_vm0, %v2114_v58 }
 0x189   : > { %v2450_v43 = vpop.f32.mrb[2].mxu0 }
 0x18a   : > { %v1955_v44 = vadd.f32 %v2450_v43, %v4013_v54  ;;  %v1949_v34 = vpop.f32.mrb[3].mxu0 }
 0x18b   : > { %v1950_v50 = vadd.f32 %v4013_v54, %v1949_v34 }
 0x18c   : > { %v2101_v57 = vmax.f32 %v1955_v44, 0.0 }
 0x18d   : > { %v2474_v19 = vpop.f32.mrb[2].mxu1  ;;  %v2100_v18 = vmax.f32 %v1950_v50, 0.0 }
 0x18e   : > { %2133 = vst.msk [vmem:[%s4021_s6 + $0x18] sm:$0xff] %vm830_vm0, %v2101_v57  ;;  %v2035_v47 = vadd.f32 %v2474_v19, %v4013_v54  ;;  %v2029_v61 = vpop.f32.mrb[3].mxu1 }
 0x18f   : > { %2132 = vst.msk [vmem:[%s4021_s6 + $0x10] sm:$0xff] %vm830_vm0, %v2100_v18  ;;  %v2030_v13 = vadd.f32 %v4013_v54, %v2029_v61 }
 0x190   : > { %v2117_v52 = vmax.f32 %v2035_v47, 0.0 }
 0x191   : > { %v2116_v32 = vmax.f32 %v2030_v13, 0.0 }
 0x192   : > { %2149 = vst.msk [vmem:[%s4021_s6 + $0x98] sm:$0xff] %vm830_vm0, %v2117_v52 }
 0x193   : > { %2148 = vst.msk [vmem:[%s4021_s6 + $0x90] sm:$0xff] %vm830_vm0, %v2116_v32 }
 0x19e   : > { %v2453_v33 = vpop.f32.mrb[4].mxu0 }
 0x19f   : > { %v1965_v17 = vadd.f32 %v2453_v33, %v4013_v54  ;;  %v1959_v12 = vpop.f32.mrb[5].mxu0 }
 0x1a0   : > { %v1960_v28 = vadd.f32 %v4013_v54, %v1959_v12 }
 0x1a1   : > { %v2103_v26 = vmax.f32 %v1965_v17, 0.0 }
 0x1a2   : > { %v2102_v24 = vmax.f32 %v1960_v28, 0.0 }
 0x1a3   : > { %2135 = vst.msk [vmem:[%s4021_s6 + $0x28] sm:$0xff] %vm830_vm0, %v2103_v26  ;;  %v2477_v31 = vpop.f32.mrb[4].mxu1 }
 0x1a4   : > { %v2045_v56 = vadd.f32 %v2477_v31, %v4013_v54  ;;  %2134 = vst.msk [vmem:[%s4021_s6 + $0x20] sm:$0xff] %vm830_vm0, %v2102_v24  ;;  %v2039_v45 = vpop.f32.mrb[5].mxu1 }
 0x1a5   : > { %v2040_v38 = vadd.f32 %v4013_v54, %v2039_v45 }
 0x1a6   : > { %v2119_v42 = vmax.f32 %v2045_v56, 0.0 }
 0x1a7   : > { %v2118_v5 = vmax.f32 %v2040_v38, 0.0 }
 0x1a8   : > { %2151 = vst.msk [vmem:[%s4021_s6 + $0xa8] sm:$0xff] %vm830_vm0, %v2119_v42 }
 0x1a9   : > { %2150 = vst.msk [vmem:[%s4021_s6 + $0xa0] sm:$0xff] %vm830_vm0, %v2118_v5 }
 0x1b3   : > { %v2456_v62 = vpop.f32.mrb[6].mxu0 }
 0x1b4   : > { %v1975_v35 = vadd.f32 %v2456_v62, %v4013_v54  ;;  %v1969_v8 = vpop.f32.mrb[7].mxu0 }
 0x1b5   : > { %v1970_v23 = vadd.f32 %v4013_v54, %v1969_v8 }
 0x1b6   : > { %v2105_v59 = vmax.f32 %v1975_v35, 0.0 }
 0x1b7   : > { %v2104_v10 = vmax.f32 %v1970_v23, 0.0 }
 0x1b8   : > { %2137 = vst.msk [vmem:[%s4021_s6 + $0x38] sm:$0xff] %vm830_vm0, %v2105_v59  ;;  %v2480_v27 = vpop.f32.mrb[6].mxu1 }
 0x1b9   : > { %v2055_v51 = vadd.f32 %v2480_v27, %v4013_v54  ;;  %2136 = vst.msk [vmem:[%s4021_s6 + $0x30] sm:$0xff] %vm830_vm0, %v2104_v10  ;;  %v2049_v60 = vpop.f32.mrb[7].mxu1 }
 0x1ba   : > { %v2050_v9 = vadd.f32 %v4013_v54, %v2049_v60 }
 0x1bb   : > { %v2121_v0 = vmax.f32 %v2055_v51, 0.0 }
 0x1bc   : > { %v2120_v15 = vmax.f32 %v2050_v9, 0.0 }
 0x1bd   : > { %2153 = vst.msk [vmem:[%s4021_s6 + $0xb8] sm:$0xff] %vm830_vm0, %v2121_v0 }
 0x1be   : > { %2152 = vst.msk [vmem:[%s4021_s6 + $0xb0] sm:$0xff] %vm830_vm0, %v2120_v15 }
 0x1c9   : > { %v2459_v21 = vpop.f32.mrb[8].mxu0 }
 0x1ca   : > { %v1985_v37 = vadd.f32 %v2459_v21, %v4013_v54  ;;  %v1979_v3 = vpop.f32.mrb[9].mxu0 }
 0x1cb   : > { %v1980_v55 = vadd.f32 %v4013_v54, %v1979_v3 }
 0x1cc   : > { %v2107_v22 = vmax.f32 %v1985_v37, 0.0 }
 0x1cd   : > { %v2106_v1 = vmax.f32 %v1980_v55, 0.0 }
 0x1ce   : > { %2139 = vst.msk [vmem:[%s4021_s6 + $0x48] sm:$0xff] %vm830_vm0, %v2107_v22  ;;  %v2483_v29 = vpop.f32.mrb[8].mxu1 }
 0x1cf   : > { %v2065_v39 = vadd.f32 %v2483_v29, %v4013_v54  ;;  %2138 = vst.msk [vmem:[%s4021_s6 + $0x40] sm:$0xff] %vm830_vm0, %v2106_v1  ;;  %v2059_v49 = vpop.f32.mrb[9].mxu1 }
 0x1d0   : > { %v2060_v25 = vadd.f32 %v4013_v54, %v2059_v49 }
 0x1d1   : > { %v2123_v41 = vmax.f32 %v2065_v39, 0.0 }
 0x1d2   : > { %v2122_v63 = vmax.f32 %v2060_v25, 0.0 }
 0x1d3   : > { %2155 = vst.msk [vmem:[%s4021_s6 + $0xc8] sm:$0xff] %vm830_vm0, %v2123_v41 }
 0x1d4   : > { %2154 = vst.msk [vmem:[%s4021_s6 + $0xc0] sm:$0xff] %vm830_vm0, %v2122_v63 }
 0x1df   : > { %v2462_v6 = vpop.f32.mrb[10].mxu0 }
 0x1e0   : > { %v1995_v14 = vadd.f32 %v2462_v6, %v4013_v54  ;;  %v1989_v16 = vpop.f32.mrb[11].mxu0 }
 0x1e1   : > { %v1990_v11 = vadd.f32 %v4013_v54, %v1989_v16 }
 0x1e2   : > { %v2109_v48 = vmax.f32 %v1995_v14, 0.0 }
 0x1e3   : > { %v2108_v46 = vmax.f32 %v1990_v11, 0.0 }
 0x1e4   : > { %2141 = vst.msk [vmem:[%s4021_s6 + $0x58] sm:$0xff] %vm830_vm0, %v2109_v48  ;;  %v2486_v4 = vpop.f32.mrb[10].mxu1 }
 0x1e5   : > { %2140 = vst.msk [vmem:[%s4021_s6 + $0x50] sm:$0xff] %vm830_vm0, %v2108_v46  ;;  %v2075_v36 = vadd.f32 %v2486_v4, %v4013_v54  ;;  %v2069_v7 = vpop.f32.mrb[11].mxu1 }
 0x1e6   : > { %v2070_v20 = vadd.f32 %v4013_v54, %v2069_v7 }
 0x1e7   : > { %v2125_v30 = vmax.f32 %v2075_v36, 0.0 }
 0x1e8   : > { %v2124_v2 = vmax.f32 %v2070_v20, 0.0 }
 0x1e9   : > { %2157 = vst.msk [vmem:[%s4021_s6 + $0xd8] sm:$0xff] %vm830_vm0, %v2125_v30 }
 0x1ea   : > { %2156 = vst.msk [vmem:[%s4021_s6 + $0xd0] sm:$0xff] %vm830_vm0, %v2124_v2 }
 0x1f3   : > { %v2465_v40 = vpop.f32.mrb[12].mxu0 }
 0x1f4   : > { %v2005_v53 = vadd.f32 %v2465_v40, %v4013_v54  ;;  %v1999_v58 = vpop.f32.mrb[13].mxu0 }
 0x1f5   : > { %v2000_v43 = vadd.f32 %v4013_v54, %v1999_v58 }
 0x1f6   : > { %v2111_v44 = vmax.f32 %v2005_v53, 0.0 }
 0x1f7   : > { %v2110_v34 = vmax.f32 %v2000_v43, 0.0 }
 0x1f8   : > { %2143 = vst.msk [vmem:[%s4021_s6 + $0x68] sm:$0xff] %vm830_vm0, %v2111_v44  ;;  %v2489_v50 = vpop.f32.mrb[12].mxu1 }
 0x1f9   : > { %v2085_v57 = vadd.f32 %v2489_v50, %v4013_v54  ;;  %2142 = vst.msk [vmem:[%s4021_s6 + $0x60] sm:$0xff] %vm830_vm0, %v2110_v34  ;;  %v2079_v19 = vpop.f32.mrb[13].mxu1 }
 0x1fa   : > { %v2080_v18 = vadd.f32 %v4013_v54, %v2079_v19 }
 0x1fb   : > { %v2127_v47 = vmax.f32 %v2085_v57, 0.0 }
 0x1fc   : > { %v2126_v61 = vmax.f32 %v2080_v18, 0.0 }
 0x1fd   : > { %2159 = vst.msk [vmem:[%s4021_s6 + $0xe8] sm:$0xff] %vm830_vm0, %v2127_v47 }
 0x1fe   : > { %2158 = vst.msk [vmem:[%s4021_s6 + $0xe0] sm:$0xff] %vm830_vm0, %v2126_v61 }
 0x207   : > { %v2468_v13 = vpop.f32.mrb[14].mxu0 }
 0x208   : > { %v2015_v52 = vadd.f32 %v2468_v13, %v4013_v54  ;;  %v2009_v32 = vpop.f32.mrb[15].mxu0 }
 0x209   : > { %v2010_v33 = vadd.f32 %v4013_v54, %v2009_v32 }
 0x20a   : > { %v2113_v17 = vmax.f32 %v2015_v52, 0.0 }
 0x20b   : > { %v2112_v12 = vmax.f32 %v2010_v33, 0.0  ;;  %v2492_v28 = vpop.f32.mrb[14].mxu1 }
 0x20c   : > { %2145 = vst.msk [vmem:[%s4021_s6 + $0x78] sm:$0xff] %vm830_vm0, %v2113_v17  ;;  %v2095_v26 = vadd.f32 %v2492_v28, %v4013_v54  ;;  %v2089_v24 = vpop.f32.mrb[15].mxu1 }
 0x20d   : > { %2144 = vst.msk [vmem:[%s4021_s6 + $0x70] sm:$0xff] %vm830_vm0, %v2112_v12  ;;  %v2090_v31 = vadd.f32 %v4013_v54, %v2089_v24 }
 0x20e   : > { %v2129_v56 = vmax.f32 %v2095_v26, 0.0 }
 0x20f   : > { %v2128_v45 = vmax.f32 %v2090_v31, 0.0 }
 0x210   : > { %2161 = vst.msk [vmem:[%s4021_s6 + $0xf8] sm:$0xff] %vm830_vm0, %v2129_v56 }
 0x211   : > { %2160 = vst.msk [vmem:[%s4021_s6 + $0xf0] sm:$0xff] %vm830_vm0, %v2128_v45 }
 0x212   : > { %2612 = shalt.err (!%p2609_p3)
}
 0x213   : > { %s2613_s14 = scalar_lea.hbm %s4116_s26, 4096  ;;  %s2617_s0 = scalar_lea.hbm %s4180_s8, 8192 }
 0x214   : > { %p2614_p5 = scmp.ne.s32.totalorder %s4116_s26, %s2613_s14  ;;  %p2618_p9 = scmp.lt.u32.totalorder %s4116_s26, %s4180_s8 }
 0x215   : > { %p2619_p10 = scmp.lt.u32.totalorder %s2617_s0, %s2613_s14  ;;  %p2621_p12 = scmp.lt.u32.totalorder %s2613_s14, %s4116_s26 }
 0x216   : > { %p2615_p6 = pnand %p2614_p5, %p2773_p4 }
 0x217   : > { %p2620_p11 = por %p2619_p10, %p2618_p9 }
 0x218   : > { %p2616_p7 = pneg %p2615_p6 }
 0x219   : > { %p2622_p13 = por %p2621_p12, %p2620_p11 }
 0x21b   : > { %p2623_p0 = pnand %p2622_p13, %p2616_p7 }
 0x21d   : > { %2626 = shalt.err (!%p2623_p0)
}
 0x21e   : > { %s2686_s16 = smov 128   ;;  %s2687_s11 = smov 8  }
 0x21f   : > { %2507 = dma.vmem_to_hbm [thread:$0]  (%p2773_p4), %s4118_s22, 4096, %s4116_s26, %s4126_s30, %s2686_s16, %s2686_s16, %s2687_s11  }
 0x220 PF: > { %p2520_p1 = scmp.ge.s32.totalorder %s2681_s10, 2  ;;  %s2194_s23 = sand.u32 1, %s2661_s27  }
 0x221   : > { %s2195_s24 = scalar_lea.sflag [#allocation4], %s2194_s23 }
 0x222   : > { %p2514_p2 = pnand %p2520_p1, %p2780_p8 }
 0x224   : > { %2656 = dma.done.wait (!%p2514_p2), %s2195_s24, 4096  }
 0x225   : > { %2658 = vsyncadd (!%p2514_p2), %s2195_s24, 4294963200  ;;  %s22_s10 = sadd.s32 1, %s2681_s10   ;;  %s4207_s27 = smov %s2665_s28 }
 0x226   : > { %p19_p3 = scmp.ge.s32.totalorder %s22_s10, 4   ;;  %s4208_s28 = smov %s2669_s29 }
 0x227   : > { %s4209_s29 = smov %s2786_s18  ;;  %s4210_s30 = smov %s2677_s9 }
 0x228   : > { %s4211_s9 = smov %s4213_s13  ;;  %21 = sbr.rel (!%p19_p3) target bundleno = 8 (0x8), region = 106 }
 0x22f   :  { %2200 = vsyncpa [#allocation4], 1 }
 0x230   :  { %2202 = vsyncpa [#allocation4 + $0x1], 1 }
 0x231   :  { %2203 = vsyncpa [#allocation5], 1 }
 0x232   :  { %2205 = vsyncpa [#allocation5 + $0x1], 1 }

</bundles_post_ra>
